<compile_context>
chip_gen: v7x
topology: tpu7x:2x2x1
jax: 0.10.0
libtpu: 0.0.40
codegen_flags: <defaults>
</compile_context>

<pallas_src>
import functools

import jax
import jax.numpy as jnp
from jax import lax
from jax.experimental import pallas as pl
from jax.experimental.pallas import tpu as pltpu


# ---------------------------------------------------------------------------
# Host-side xPos precomputation (pure JAX, runs once outside the kernels).
# ---------------------------------------------------------------------------
def _xpos_1d_factors(length, d, scale_base, downscale):
    """Duplicate-interleaved (cos*scale, sin*scale) factors of torchscale XPOS.

    Returns (cos_s, sin_s), each (length, d), such that
      xpos(x)[l] = x[l] * cos_s[l] + rotate_every_two(x)[l] * sin_s[l]
    for a 1-D axis of `length` positions acting on `d` channels (offset = 0).
    """
    half = d // 2
    base = (jnp.arange(0, d, 2, dtype=jnp.float32) + 0.4 * d) / (1.4 * d)
    min_pos = -length // 2
    pos = jnp.arange(min_pos, length + min_pos, dtype=jnp.float32)       # centered
    scale = base[None, :] ** (pos[:, None] / scale_base)                 # (L, half)
    inv_freq = 1.0 / (10000.0 ** (jnp.arange(half, dtype=jnp.float32) / half))
    sinusoid = jnp.arange(length, dtype=jnp.float32)[:, None] * inv_freq[None, :]
    sin, cos = jnp.sin(sinusoid), jnp.cos(sinusoid)
    if downscale:
        scale = 1.0 / scale
    cos_s = jnp.repeat(cos * scale, 2, axis=-1)                          # duplicate_interleave
    sin_s = jnp.repeat(sin * scale, 2, axis=-1)
    return cos_s, sin_s


def _xpos_2d_maps(H, W, head_dim, scale_base, downscale):
    """Per-head (H*W, head_dim) multiplicative maps for separable 2-D xPos.

    First head_dim//2 channels follow the W axis, the rest follow the H axis.
    Flattened position index l = y*W + x (row-major), matching x.reshape(L, D).
    """
    d_axis = head_dim // 2
    cs_w, ss_w = _xpos_1d_factors(W, d_axis, scale_base, downscale)      # (W, d_axis)
    cs_h, ss_h = _xpos_1d_factors(H, d_axis, scale_base, downscale)      # (H, d_axis)
    cs = jnp.concatenate(
        [jnp.broadcast_to(cs_w[None, :, :], (H, W, d_axis)),
         jnp.broadcast_to(cs_h[:, None, :], (H, W, d_axis))], axis=-1)
    ss = jnp.concatenate(
        [jnp.broadcast_to(ss_w[None, :, :], (H, W, d_axis)),
         jnp.broadcast_to(ss_h[:, None, :], (H, W, d_axis))], axis=-1)
    return cs.reshape(H * W, head_dim), ss.reshape(H * W, head_dim)


def _rotate_every_two_cols(w):
    """Return w_rot with (x @ w_rot) == rotate_every_two(x @ w) (last-axis pairs)."""
    ev = w[..., 0::2]
    od = w[..., 1::2]
    return jnp.stack([-od, ev], axis=-1).reshape(w.shape)


# ---------------------------------------------------------------------------
# Tiling / resource helpers.
# ---------------------------------------------------------------------------
def _vmem_limit_bytes(est):
    try:
        cap = int(pltpu.get_tpu_info().vmem_capacity_bytes)
    except Exception:
        cap = 64 * 2 ** 20            # assume the smallest (v7x per-core) VMEM
    cap = max(32 * 2 ** 20, cap - 24 * 2 ** 20)   # leave compiler headroom
    return int(min(max(est, 32 * 2 ** 20), cap))


def _choose_query_tile(Lq, B, tq=None):
    if tq is None:
        tq = 256                       # measured sweet spot for pipelining
    tq = max(8, min(tq, Lq))
    tq = (tq + 7) // 8 * 8             # sublane multiple
    # keep >= 2 parallel grid slices so both v7x TensorCores get work
    if B * (-(-Lq // tq)) < 2 and Lq > 8:
        tq = max(8, ((Lq // 2 + 7) // 8) * 8)
    return tq


def _choose_key_tile(Lk):
    if Lk <= 512:
        return Lk
    for cand in (512, 256, 128, 64, 32, 16, 8):
        if Lk % cand == 0:
            return cand
    # TODO(synk): pad + mask the key axis for large Lk not divisible by 8.
    return Lk


def _choose_heads_per_step(num_heads, head_dim, requested=None):
    if requested is not None:
        hp = requested
    else:
        # pair heads so per-step matmul widths reach 256 (v6e/v7x MXU width).
        hp = 2 if num_heads % 2 == 0 else 1
    # the per-group K/V channel slab must be 128-lane aligned (or the full D).
    while (hp * head_dim) % 128 and hp < num_heads and num_heads % (2 * hp) == 0:
        hp *= 2
    if (hp * head_dim) % 128 and hp * head_dim != num_heads * head_dim:
        hp = num_heads                 # fall back to one full-width group
    assert num_heads % hp == 0
    return hp


# ---------------------------------------------------------------------------
# Kernel 1: per-batch K/KR/V projection + xPos(K) pre-pass (hoisted).
# ---------------------------------------------------------------------------
def _kv_prepass_kernel(x_ref, w_ref, b_ref, cs_ref, ss_ref, k_ref, v_ref, *, d):
    f32 = jnp.float32
    # fused [k | rot(k) | v] projection: (TK, D) x (D, 3D) on the MXU.
    pj = jnp.dot(x_ref[0], w_ref[...], preferred_element_type=f32) + b_ref[...]
    k, kr, v = pj[:, :d], pj[:, d:2 * d], pj[:, 2 * d:]
    # xPos (rotary + decay, downscale) on K as pure element-wise f32 math.
    k_ref[0] = (k * cs_ref[...] + kr * ss_ref[...]).astype(k_ref.dtype)
    v_ref[0] = v.astype(v_ref.dtype)


def _kv_prepass(x, w_kv, b_kv, cs, ss, *, tk):
    B, Lk, D = x.shape
    n_kt = Lk // tk
    est = (2 * D * 3 * D * 2                 # resident fused weight (x2 buffers)
           + 2 * tk * D * 2                  # x blocks
           + 4 * tk * D * 2                  # two bf16 output blocks (x2)
           + 4 * tk * D * 4                  # cs/ss blocks
           + 6 * tk * D * 4)                 # live f32 temporaries
    return pl.pallas_call(
        functools.partial(_kv_prepass_kernel, d=D),
        out_shape=(jax.ShapeDtypeStruct((B, Lk, D), jnp.bfloat16),
                   jax.ShapeDtypeStruct((B, Lk, D), jnp.bfloat16)),
        grid_spec=pltpu.PrefetchScalarGridSpec(
            num_scalar_prefetch=0,
            grid=(B, n_kt),
            in_specs=[
                pl.BlockSpec((1, tk, D), lambda b, t: (b, t, 0)),   # key/value input (bf16)
                pl.BlockSpec((D, 3 * D), lambda b, t: (0, 0)),      # [wk|wkr|wv]  (resident)
                pl.BlockSpec((1, 3 * D), lambda b, t: (0, 0)),      # fused bias   (resident)
                pl.BlockSpec((tk, D), lambda b, t: (t, 0)),         # xPos cos map
                pl.BlockSpec((tk, D), lambda b, t: (t, 0)),         # xPos sin map
            ],
            out_specs=[
                pl.BlockSpec((1, tk, D), lambda b, t: (b, t, 0)),   # K (xPos'd, bf16)
                pl.BlockSpec((1, tk, D), lambda b, t: (b, t, 0)),   # V (bf16)
            ],
        ),
        compiler_params=pltpu.CompilerParams(
            dimension_semantics=("parallel", "parallel"),
            vmem_limit_bytes=_vmem_limit_bytes(est),
        ),
    )(x, w_kv, b_kv, cs, ss)


# ---------------------------------------------------------------------------
# Kernel 2: attention over one (batch, query-tile, head-group) grid step.
# ---------------------------------------------------------------------------
def _attn_kernel(q_ref, k_ref, v_ref, csq_ref, ssq_ref,
                 wq_ref, bq_ref, wo_ref, bo_ref,
                 o_ref, acc_ref, *, hd, hp):
    g = pl.program_id(2)
    f32 = jnp.float32
    bf16 = jnp.bfloat16

    @pl.when(g == 0)
    def _init():
        acc_ref[...] = jnp.zeros_like(acc_ref)

    # Fused q / rotated-q projection for all hp heads of this group:
    # (TQ, D) x (D, hp*2*hd) on the MXU, f32 accumulation + f32 bias.
    qq = jnp.dot(q_ref[0], wq_ref[g], preferred_element_type=f32) + bq_ref[g]

    csq = csq_ref[...]                 # (TQ, hd) f32 — 1/sqrt(hd) already folded in
    ssq = ssq_ref[...]
    kblk = k_ref[0]                    # (Lk, hp*hd) bf16, xPos already applied
    vblk = v_ref[0]                    # (Lk, hp*hd) bf16

    ctxs = []
    for j in range(hp):                # static, unrolled
        q = qq[:, (2 * j) * hd:(2 * j + 1) * hd]
        qr = qq[:, (2 * j + 1) * hd:(2 * j + 2) * hd]
        qx = (q * csq + qr * ssq).astype(bf16)                 # xPos(q) * scaling
        kj = kblk[:, j * hd:(j + 1) * hd]
        vj = vblk[:, j * hd:(j + 1) * hd]
        # Scores: the MXU performs the K "transpose" via the contraction dims.
        s = lax.dot_general(qx, kj, (((1,), (1,)), ((), ())),
                            preferred_element_type=f32)        # (TQ, Lk)
        s = s - jnp.max(s, axis=-1, keepdims=True)
        p = jnp.exp(s)
        denom = jnp.sum(p, axis=-1, keepdims=True)
        ctx = jnp.dot(p.astype(bf16), vj, preferred_element_type=f32)   # (TQ, hd)
        # Normalize after PV (hd-wide pass instead of Lk-wide) on the EUP slot.
        ctxs.append(ctx * pl.reciprocal(denom, approx=True))
    ctx = ctxs[0] if hp == 1 else jnp.concatenate(ctxs, axis=-1)        # (TQ, hp*hd)

    # Out-projection partial product for this head group (no concat over groups).
    acc_ref[...] += jnp.dot(ctx.astype(bf16), wo_ref[g],
                            preferred_element_type=f32)                 # (TQ, D)

    @pl.when(g == pl.num_programs(2) - 1)
    def _finalize():
        o_ref[0] = (acc_ref[...] + bo_ref[...]).astype(o_ref.dtype)


# ---------------------------------------------------------------------------
# Wrapper: host-side weight packing + two pallas_calls.
# ---------------------------------------------------------------------------
def xpos_multihead_attention_2d(query, key, value, params, *, num_heads,
                                scale_base=None, tq=None, heads_per_step=None):
    B, qh, qw, D = query.shape
    Bk, kh_, kw_, Dk = key.shape
    assert (Bk, Dk) == (B, D) and value.shape == key.shape
    assert D % num_heads == 0
    hd = D // num_heads
    assert hd % 4 == 0, "xPos 2-D split needs head_dim % 4 == 0"
    Lq, Lk = qh * qw, kh_ * kw_
    if scale_base is None:
        scale_base = D
    scaling = float(hd) ** -0.5
    f32, bf16 = jnp.float32, jnp.bfloat16

    hp = _choose_heads_per_step(num_heads, hd, heads_per_step)
    n_grp = num_heads // hp
    gh = hp * hd

    tq = _choose_query_tile(Lq, B, tq)
    n_qt = -(-Lq // tq)
    Lq_pad = n_qt * tq
    tk = _choose_key_tile(Lk)

    # ---- xPos factor maps (per-head; identical for every head) --------------
    csq, ssq = _xpos_2d_maps(qh, qw, hd, scale_base, downscale=False)   # (Lq, hd)
    csk, ssk = _xpos_2d_maps(kh_, kw_, hd, scale_base, downscale=True)  # (Lk, hd)
    csq = (csq * scaling).astype(f32)      # fold 1/sqrt(hd) into the q maps
    ssq = (ssq * scaling).astype(f32)
    if Lq_pad != Lq:
        pad = Lq_pad - Lq
        csq = jnp.pad(csq, ((0, pad), (0, 0)))
        ssq = jnp.pad(ssq, ((0, pad), (0, 0)))
    csk_full = jnp.tile(csk, (1, num_heads)).astype(f32)                # (Lk, D)
    ssk_full = jnp.tile(ssk, (1, num_heads)).astype(f32)

    # ---- weight packing (bf16 for the MXU; biases stay f32) -----------------
    wq, wk, wv, wo = params["wq"], params["wk"], params["wv"], params["wo"]
    bq, bk, bv, bo = params["bq"], params["bk"], params["bv"], params["bo"]
    wqr, bqr = _rotate_every_two_cols(wq), _rotate_every_two_cols(bq)
    wkr, bkr = _rotate_every_two_cols(wk), _rotate_every_two_cols(bk)

    # q projection fused with its pre-rotated copy, hp heads per group:
    # per-group columns are [q_h0 | qr_h0 | q_h1 | qr_h1 | ...]
    wq_all = (jnp.concatenate([wq.reshape(D, num_heads, hd),
                               wqr.reshape(D, num_heads, hd)], axis=-1)
              .reshape(D, n_grp, hp * 2 * hd)
              .transpose(1, 0, 2).astype(bf16))                         # (n_grp, D, hp*2hd)
    bq_all = (jnp.concatenate([bq.reshape(num_heads, hd),
                               bqr.reshape(num_heads, hd)], axis=-1)
              .reshape(n_grp, 1, hp * 2 * hd).astype(f32))
    wo_all = wo.reshape(n_grp, hp * hd, D).astype(bf16)                 # (n_grp, hp*hd, D)
    bo_2d = bo.reshape(1, D).astype(f32)

    # ---- inputs: flatten spatial dims, cast to bf16 on the host -------------
    q_flat = query.reshape(B, Lq, D).astype(bf16)
    if Lq_pad != Lq:
        q_flat = jnp.pad(q_flat, ((0, 0), (0, Lq_pad - Lq), (0, 0)))

    # ---- pre-pass: hoisted K/KR/V projections + xPos(K), bf16 outputs -------
    if key is value:
        w_kv = jnp.concatenate([wk, wkr, wv], axis=-1).astype(bf16)     # (D, 3D)
        b_kv = jnp.concatenate([bk, bkr, bv], axis=-1).astype(f32)      # (1, 3D)
        kv_flat = key.reshape(B, Lk, D).astype(bf16)                    # read once
        k_pre, v_pre = _kv_prepass(kv_flat, w_kv, b_kv, csk_full, ssk_full, tk=tk)
    else:
        # TODO(synk): dedicated cross-attention pre-pass; plain XLA GEMMs here.
        kf = key.reshape(B, Lk, D)
        vf = value.reshape(B, Lk, D)
        k_p = kf @ wk + bk
        kr_p = kf @ wkr + bkr
        k_pre = (k_p * csk_full + kr_p * ssk_full).astype(bf16)
        v_pre = (vf @ wv + bv).astype(bf16)

    # ---- attention kernel ----------------------------------------------------
    out_bytes = jnp.dtype(query.dtype).itemsize
    est = (2 * (num_heads * D * 2 * hd * 2 + num_heads * hd * D * 2     # resident stacks
                + num_heads * 2 * hd * 4 + D * 4)
           + 2 * tq * D * 2 + 4 * Lk * gh * 2 + 4 * tq * hd * 4         # pipelined blocks
           + 2 * tq * D * out_bytes + tq * D * 4                        # out blocks + scratch
           + 2 * tq * Lk * 4 + tq * 2 * gh * 4 + 4 * tq * D * 4)        # live temporaries

    out = pl.pallas_call(
        functools.partial(_attn_kernel, hd=hd, hp=hp),
        out_shape=jax.ShapeDtypeStruct((B, Lq_pad, D), query.dtype),
        grid_spec=pltpu.PrefetchScalarGridSpec(
            num_scalar_prefetch=0,
            grid=(B, n_qt, n_grp),
            in_specs=[
                pl.BlockSpec((1, tq, D), lambda b, t, g: (b, t, 0)),            # q (bf16)
                pl.BlockSpec((1, Lk, gh), lambda b, t, g: (b, 0, g)),           # K slab (group)
                pl.BlockSpec((1, Lk, gh), lambda b, t, g: (b, 0, g)),           # V slab (group)
                pl.BlockSpec((tq, hd), lambda b, t, g: (t, 0)),                 # csq (scaled)
                pl.BlockSpec((tq, hd), lambda b, t, g: (t, 0)),                 # ssq (scaled)
                pl.BlockSpec((n_grp, D, hp * 2 * hd), lambda b, t, g: (0, 0, 0)),  # wq stack
                pl.BlockSpec((n_grp, 1, hp * 2 * hd), lambda b, t, g: (0, 0, 0)),  # bq stack
                pl.BlockSpec((n_grp, hp * hd, D), lambda b, t, g: (0, 0, 0)),      # wo stack
                pl.BlockSpec((1, D), lambda b, t, g: (0, 0)),                      # bo
            ],
            out_specs=pl.BlockSpec((1, tq, D), lambda b, t, g: (b, t, 0)),
            scratch_shapes=[pltpu.VMEM((tq, D), jnp.float32)],
        ),
        compiler_params=pltpu.CompilerParams(
            dimension_semantics=("parallel", "parallel", "arbitrary"),
            vmem_limit_bytes=_vmem_limit_bytes(est),
        ),
    )(q_flat, k_pre, v_pre, csq, ssq, wq_all, bq_all, wo_all, bo_2d)

    if Lq_pad != Lq:
        out = out[:, :Lq]
    return out.reshape(B, qh, qw, D)


# ---------------------------------------------------------------------------
# Pure-JAX reference mirroring the PyTorch forward (f32, interleaved rotation).
# ---------------------------------------------------------------------------
def _rotate_every_two(x):
    x1 = x[..., 0::2]
    x2 = x[..., 1::2]
    return jnp.stack([-x2, x1], axis=-1).reshape(x.shape)


def _xpos_1d_ref(x, *, scale_base, offset=0, downscale=False):
    _, length, d = x.shape
    half = d // 2
    base = (jnp.arange(0, d, 2, dtype=jnp.float32) + 0.4 * d) / (1.4 * d)
    min_pos = -(length + offset) // 2
    pos = jnp.arange(min_pos, length + offset + min_pos, dtype=jnp.float32)
    scale = base[None, :] ** (pos[:, None] / scale_base)
    inv_freq = 1.0 / (10000.0 ** (jnp.arange(half, dtype=jnp.float32) / half))
    sinusoid = jnp.arange(scale.shape[0], dtype=jnp.float32)[:, None] * inv_freq[None, :]
    sin, cos = jnp.sin(sinusoid), jnp.cos(sinusoid)
    if downscale:
        scale = 1.0 / scale
    sin_s = jnp.repeat(sin * scale, 2, axis=-1)
    cos_s = jnp.repeat(cos * scale, 2, axis=-1)
    return x * cos_s + _rotate_every_two(x) * sin_s


def _xpos_2d_ref(x, *, scale_base, offset_x=0, offset_y=0, downscale=False):
    n, H, W, d = x.shape
    half = d // 2
    x_row, x_col = x[..., :half], x[..., half:]
    x_row = _xpos_1d_ref(x_row.reshape(n * H, W, half), scale_base=scale_base,
                         offset=offset_x, downscale=downscale).reshape(n, H, W, half)
    x_col = jnp.swapaxes(x_col, 1, 2).reshape(n * W, H, half)
    x_col = _xpos_1d_ref(x_col, scale_base=scale_base, offset=offset_y,
                         downscale=downscale)
    x_col = jnp.swapaxes(x_col.reshape(n, W, H, half), 1, 2)
    return jnp.concatenate([x_row, x_col], axis=-1)


def reference(query, key, value, params, *, num_heads, scale_base):
    B, Hq, Wq, D = query.shape
    _, Hk, Wk, _ = key.shape
    hd = D // num_heads
    q = query @ params["wq"] + params["bq"][0]
    k = key @ params["wk"] + params["bk"][0]
    v = value @ params["wv"] + params["bv"][0]
    q = q * (float(hd) ** -0.5)

    def split_heads(t, H, W):
        t = t.reshape(B, H, W, num_heads, hd)
        return jnp.transpose(t, (0, 3, 1, 2, 4)).reshape(B * num_heads, H, W, hd)

    qh_ = split_heads(q, Hq, Wq)
    kh_ = split_heads(k, Hk, Wk)
    vh_ = split_heads(v, Hk, Wk)
    kh_ = _xpos_2d_ref(kh_, scale_base=scale_base, downscale=True)
    qh_ = _xpos_2d_ref(qh_, scale_base=scale_base, downscale=False)
    Lq, Lk = Hq * Wq, Hk * Wk
    qf = qh_.reshape(B * num_heads, Lq, hd)
    kf = kh_.reshape(B * num_heads, Lk, hd)
    vf = vh_.reshape(B * num_heads, Lk, hd)
    attn_w = jax.nn.softmax(jnp.einsum("bld,bmd->blm", qf, kf), axis=-1)
    at = jnp.einsum("blm,bmd->bld", attn_w, vf)
    at = at.reshape(B, num_heads, Lq, hd).transpose(0, 2, 1, 3).reshape(B, Lq, D)
    at = at @ params["wo"] + params["bo"][0]
    return at.reshape(B, Hq, Wq, D)


if __name__ == "__main__":
    # Small but TPU-natural shapes: head_dim = 128 (full MXU lane width),
    # 4 heads => 2 head-groups (exercises the accumulation axis), tq=32 =>
    # 2 query tiles per batch (exercises the parallel axes).
    B, H, W, D, NHEAD = 2, 8, 8, 512, 4

    key = jax.random.PRNGKey(0)
    ks = jax.random.split(key, 9)

    def wgen(k, shape, scale=0.03):
        return (scale * jax.random.normal(k, shape)).astype(jnp.float32)

    params = {
        "wq": wgen(ks[0], (D, D)), "bq": wgen(ks[1], (1, D)),
        "wk": wgen(ks[2], (D, D)), "bk": wgen(ks[3], (1, D)),
        "wv": wgen(ks[4], (D, D)), "bv": wgen(ks[5], (1, D)),
        "wo": wgen(ks[6], (D, D)), "bo": wgen(ks[7], (1, D)),
    }
    x = jax.random.normal(ks[8], (B, H, W, D), jnp.float32)

    # Self-attention: query = key = value.
    out = xpos_multihead_attention_2d(x, x, x, params, num_heads=NHEAD,
                                      scale_base=D, tq=32)
    out = jax.block_until_ready(out)
    assert out.shape == (B, H, W, D)

    ref = reference(x, x, x, params, num_heads=NHEAD, scale_base=D)
    err = float(jnp.max(jnp.abs(out - ref)))
    # bf16 MXU operands (f32 accumulation) + EUP approx reciprocal softmax.
    assert err < 5e-2, f"max abs err {err}"
    print("KERNEL_OK")
</pallas_src>

<mosaic_0001>
module attributes {stable_mosaic.version = 11 : i64} {
  func.func @_kv_prepass_kernel(%arg0: i32, %arg1: i32, %arg2: memref<1x64x512xbf16, #tpu.memory_space<vmem>>, %arg3: memref<512x1536xbf16, #tpu.memory_space<vmem>>, %arg4: memref<1x1536xf32, #tpu.memory_space<vmem>>, %arg5: memref<64x512xf32, #tpu.memory_space<vmem>>, %arg6: memref<64x512xf32, #tpu.memory_space<vmem>>, %arg7: memref<1x64x512xbf16, #tpu.memory_space<vmem>>, %arg8: memref<1x64x512xbf16, #tpu.memory_space<vmem>>) attributes {dimension_semantics = [#tpu.dimension_semantics<parallel>, #tpu.dimension_semantics<parallel>], iteration_bounds = array<i64: 2, 1>, scalar_prefetch = 0 : i64, scratch_operands = 0 : i64, tpu.core_type = #tpu.core_type<tc>, window_params = [{transform_indices = @transform_0, window_bounds = array<i64: 1, 64, 512>}, {pipeline_mode = #tpu.pipeline_mode<synchronous>, transform_indices = @transform_1, window_bounds = array<i64: 512, 1536>}, {pipeline_mode = #tpu.pipeline_mode<synchronous>, transform_indices = @transform_2, window_bounds = array<i64: 1, 1536>}, {transform_indices = @transform_3, window_bounds = array<i64: 64, 512>}, {transform_indices = @transform_4, window_bounds = array<i64: 64, 512>}, {transform_indices = @transform_5, window_bounds = array<i64: 1, 64, 512>}, {transform_indices = @transform_6, window_bounds = array<i64: 1, 64, 512>}]} {
    %c0 = arith.constant 0 : index
    %c0_0 = arith.constant 0 : index
    %c0_1 = arith.constant 0 : index
    %0 = vector.load %arg2[%c0, %c0_0, %c0_1] : memref<1x64x512xbf16, #tpu.memory_space<vmem>>, vector<1x64x512xbf16>
    %1 = vector.shape_cast %0 : vector<1x64x512xbf16> to vector<64x512xbf16>
    %c0_2 = arith.constant 0 : index
    %c0_3 = arith.constant 0 : index
    %2 = vector.load %arg3[%c0_2, %c0_3] : memref<512x1536xbf16, #tpu.memory_space<vmem>>, vector<512x1536xbf16>
    %cst = arith.constant dense<0.000000e+00> : vector<64x1536xf32>
    %3 = tpu.matmul %1, %2, %cst {dimension_numbers = #tpu.dot_dimension_numbers<[1], [0], [0], [1], [0, 0, 1, 1], [], []>} : vector<64x512xbf16>, vector<512x1536xbf16>, vector<64x1536xf32> -> vector<64x1536xf32>
    %c0_4 = arith.constant 0 : index
    %c0_5 = arith.constant 0 : index
    %4 = vector.load %arg4[%c0_4, %c0_5] : memref<1x1536xf32, #tpu.memory_space<vmem>>, vector<1x1536xf32>
    %5 = vector.broadcast %4 : vector<1x1536xf32> to vector<64x1536xf32>
    %6 = arith.addf %3, %5 : vector<64x1536xf32>
    %7 = vector.extract_strided_slice %6 {offsets = [0, 0], sizes = [64, 512], strides = [1, 1]} : vector<64x1536xf32> to vector<64x512xf32>
    %8 = vector.extract_strided_slice %6 {offsets = [0, 512], sizes = [64, 512], strides = [1, 1]} : vector<64x1536xf32> to vector<64x512xf32>
    %9 = vector.extract_strided_slice %6 {offsets = [0, 1024], sizes = [64, 512], strides = [1, 1]} : vector<64x1536xf32> to vector<64x512xf32>
    %c0_6 = arith.constant 0 : index
    %c0_7 = arith.constant 0 : index
    %10 = vector.load %arg5[%c0_6, %c0_7] : memref<64x512xf32, #tpu.memory_space<vmem>>, vector<64x512xf32>
    %11 = arith.mulf %7, %10 : vector<64x512xf32>
    %c0_8 = arith.constant 0 : index
    %c0_9 = arith.constant 0 : index
    %12 = vector.load %arg6[%c0_8, %c0_9] : memref<64x512xf32, #tpu.memory_space<vmem>>, vector<64x512xf32>
    %13 = arith.mulf %8, %12 : vector<64x512xf32>
    %14 = arith.addf %11, %13 : vector<64x512xf32>
    %15 = arith.truncf %14 : vector<64x512xf32> to vector<64x512xbf16>
    %c0_10 = arith.constant 0 : index
    %c0_11 = arith.constant 0 : index
    %c0_12 = arith.constant 0 : index
    %16 = vector.load %arg7[%c0_10, %c0_11, %c0_12] : memref<1x64x512xbf16, #tpu.memory_space<vmem>>, vector<1x64x512xbf16>
    %17 = vector.shape_cast %16 : vector<1x64x512xbf16> to vector<64x512xbf16>
    %18 = vector.shape_cast %15 : vector<64x512xbf16> to vector<1x64x512xbf16>
    tpu.vector_store %arg7[%c0_10, %c0_11, %c0_12], %18 {strides = array<i32>} : memref<1x64x512xbf16, #tpu.memory_space<vmem>>, vector<1x64x512xbf16>,
    %19 = arith.truncf %9 : vector<64x512xf32> to vector<64x512xbf16>
    %c0_13 = arith.constant 0 : index
    %c0_14 = arith.constant 0 : index
    %c0_15 = arith.constant 0 : index
    %20 = vector.load %arg8[%c0_13, %c0_14, %c0_15] : memref<1x64x512xbf16, #tpu.memory_space<vmem>>, vector<1x64x512xbf16>
    %21 = vector.shape_cast %20 : vector<1x64x512xbf16> to vector<64x512xbf16>
    %22 = vector.shape_cast %19 : vector<64x512xbf16> to vector<1x64x512xbf16>
    tpu.vector_store %arg8[%c0_13, %c0_14, %c0_15], %22 {strides = array<i32>} : memref<1x64x512xbf16, #tpu.memory_space<vmem>>, vector<1x64x512xbf16>,
    return
  }
  func.func @transform_0(%arg0: i32, %arg1: i32) -> (i32, i32, i32) {
    %c0_i32 = arith.constant 0 : i32
    %c0_i32_0 = arith.constant 0 : i32
    return %arg0, %arg1, %c0_i32 : i32, i32, i32
  }
  func.func @transform_1(%arg0: i32, %arg1: i32) -> (i32, i32) {
    %c0_i32 = arith.constant 0 : i32
    %c0_i32_0 = arith.constant 0 : i32
    %c0_i32_1 = arith.constant 0 : i32
    return %c0_i32, %c0_i32_0 : i32, i32
  }
  func.func @transform_2(%arg0: i32, %arg1: i32) -> (i32, i32) {
    %c0_i32 = arith.constant 0 : i32
    %c0_i32_0 = arith.constant 0 : i32
    %c0_i32_1 = arith.constant 0 : i32
    return %c0_i32, %c0_i32_0 : i32, i32
  }
  func.func @transform_3(%arg0: i32, %arg1: i32) -> (i32, i32) {
    %c0_i32 = arith.constant 0 : i32
    %c0_i32_0 = arith.constant 0 : i32
    return %arg1, %c0_i32 : i32, i32
  }
  func.func @transform_4(%arg0: i32, %arg1: i32) -> (i32, i32) {
    %c0_i32 = arith.constant 0 : i32
    %c0_i32_0 = arith.constant 0 : i32
    return %arg1, %c0_i32 : i32, i32
  }
  func.func @transform_5(%arg0: i32, %arg1: i32) -> (i32, i32, i32) {
    %c0_i32 = arith.constant 0 : i32
    %c0_i32_0 = arith.constant 0 : i32
    return %arg0, %arg1, %c0_i32 : i32, i32, i32
  }
  func.func @transform_6(%arg0: i32, %arg1: i32) -> (i32, i32, i32) {
    %c0_i32 = arith.constant 0 : i32
    %c0_i32_0 = arith.constant 0 : i32
    return %arg0, %arg1, %c0_i32 : i32, i32, i32
  }
}

</mosaic_0001>

<bundles_post_ra>
// kernel: tpu_custom_call.1
= control target key start
LH: loop header
LB: loop body
LE: loop exit
PB: predicated region body
PF: predicated region fallthrough
CT: control target
= control target key end

     0   :  { %s6904_s0 = inlined_call_operand.hbm [shape: bf16[2,64,512], index: 0, kind: input, shape index: {}]   ;;  %s6905_s1 = inlined_call_operand.hbm [shape: bf16[512,1536], index: 1, kind: input, shape index: {}]   ;;  %s6906_s2 = inlined_call_operand.hbm [shape: f32[1,1536], index: 2, kind: input, shape index: {}]   ;;  %s6907_s3 = inlined_call_operand.hbm [shape: f32[64,512], index: 3, kind: input, shape index: {}]   ;;  %s6908_s4 = inlined_call_operand.hbm [shape: f32[64,512], index: 4, kind: input, shape index: {}]   ;;  %s6909_s5 = inlined_call_operand.hbm [shape: bf16[2,64,512], index: 5, kind: output, shape index: {0}]   ;;  %s6910_s6 = inlined_call_operand.hbm [shape: bf16[2,64,512], index: 6, kind: output, shape index: {1}]  }
   0x1   :  { %6923 = sst [smem:[#allocation27_spill]] %s6905_s1 }
   0x2   :  { %12 = vsyncpa [#allocation3], 0 }
   0x3   :  { %14 = vsyncpa [#allocation3 + $0x1], 0 }
   0x4   :  { %15 = vsyncpa [#allocation6], 0 }
   0x5   :  { %16 = vsyncpa [#allocation9], 0 }
   0x6   :  { %17 = vsyncpa [#allocation4], 0 }
   0x7   :  { %19 = vsyncpa [#allocation4 + $0x1], 0 }
   0x8   :  { %20 = vsyncpa [#allocation13], 0 }
   0x9   :  { %22 = vsyncpa [#allocation13 + $0x1], 0  ;;  %s6044_s21 = smov 0   ;;  %s6046_s22 = smov 0  }
   0xa   :  { %s6048_s23 = smov 0   ;;  %s6050_s24 = smov 0  }
   0xb   :  { %s6052_s25 = smov 0   ;;  %s6054_s26 = smov 0  }
   0xc LB: > { %6924 = sst [smem:[#allocation19_spill]] %s5972_s21  ;;  %s4310_s27 = sadd.s32 4294967295, %s5992_s26   ;;  %s5992_s26 = sphi %s6054_s26, %s28_s26   ;;  %s5988_s25 = sphi %s6052_s25, %s6964_s25   ;;  %s5984_s24 = sphi %s6050_s24, %s6963_s24   ;;  %s5980_s23 = sphi %s6048_s23, %s6962_s23   ;;  %s5976_s22 = sphi %s6046_s22, %s6961_s22   ;;  %s5972_s21 = sphi %s6044_s21, %s6960_s21  }
   0xd   : > { %s4311_s28 = sadd.s32 4294967294, %s5992_s26   ;;  %p62_p0 = scmp.ne.s32.totalorder %s5976_s22, %s5972_s21 }
   0xe   : > { %p6078_p1 = scmp.eq.s32.totalorder %s4310_s27, 0  ;;  %p6082_p2 = scmp.eq.s32.totalorder %s4310_s27, 1 }
   0xf   : > { %p188_p3 = scmp.eq.s32.totalorder %s4311_s28, 1  ;;  %p4312_p5 = scmp.ge.s32.totalorder %s5992_s26, 1 }
  0x10   : > { %s6925_s29 = scalar_select %p6078_p1, 1, 0 }
  0x11   : > { %s6926_s30 = scalar_select %p6082_p2, 1, 0 }
  0x12   : > { %p6088_p4 = por %p6078_p1, %p62_p0  ;;  %p6093_p6 = por %p188_p3, %p62_p0 }
  0x13   : > { %p223_p7 = scmp.lt.s32.totalorder %s5992_s26, 3  ;;  %s5994_s10 = smov [#allocation5]  }
  0x14   : > { %s6927_s7 = scalar_select %p6088_p4, 1, 0 }
  0x15   : > { %s6928_s8 = scalar_select %p6093_p6, 1, 0 }
  0x16   : > { %p6098_p8 = pnand %p4312_p5, %p223_p7  ;;  %s235_s11 = sshll.u32 %s5994_s10, 4  ;;  %s6102_s11 = int_to_ptr.vmem [resolvable:$true] %s235_s11 }
  0x17   : > { %6929 = sst [smem:[#allocation20_spill]] %s6928_s8  ;;  %s5995_s13 = smov [#allocation8]  }
  0x18   : > { %s6930_s9 = scalar_select %p6098_p8, 1, 0 }
  0x19   : > { %p5018_p9 = pneg %p6098_p8  ;;  %s263_s14 = sshll.u32 %s5995_s13, 4  ;;  %s6113_s14 = int_to_ptr.vmem [resolvable:$true] %s263_s14 }
  0x1a   : > { %s6932_s1 = sld [smem:[#allocation27_spill]] }
  0x1b   : > { %p6109_p11 = pnand %p5018_p9, %p6078_p1 }
  0x1d   : > { %p6123_p13 = pneg %p6109_p11 }
  0x20   : > { %s5728_s17 = scalar_lea.hbm %s6932_s1, 49152 }
  0x21   : > { %p5729_p12 = scmp.ne.s32.totalorder %s6932_s1, %s5728_s17  ;;  %p5735_p5 = scmp.lt.u32.totalorder %s5728_s17, %s6932_s1 }
  0x23   : > { %p5731_p0 = pnand %p6123_p13, %p5729_p12 }
  0x25   : > { %p5732_p3 = pneg %p5731_p0 }
  0x27   : > { %p5737_p7 = pnand %p5735_p5, %p5732_p3 }
  0x29   : > { %5740 = shalt.err (!%p5737_p7)
}
  0x2a   : > { %s5741_s10 = scalar_lea.vmem %s6102_s11, 49152  ;;  %p5749_p1 = scmp.lt.s32.totalorder %s6102_s11, %s6102_s11 }
  0x2b   : > { %p5742_p9 = scmp.ne.s32.totalorder %s6102_s11, %s5741_s10  ;;  %p5750_p4 = scmp.lt.s32.totalorder %s5741_s10, %s5741_s10 }
  0x2d   : > { %p5744_p10 = pnand %p5742_p9, %p6123_p13  ;;  %p5751_p12 = por %p5750_p4, %p5749_p1 }
  0x2f   : > { %p5745_p6 = pneg %p5744_p10 }
  0x31   : > { %p5752_p0 = pnand %p5751_p12, %p5745_p6 }
  0x33   : > { %5755 = shalt.err (!%p5752_p0)
}
  0x34   : > { %s5996_s13 = smov 768   ;;  %s5997_s15 = smov 48  }
  0x35   : > { %5021 = dma.hbm_to_vmem [thread:$0]  (!%p6109_p11), %s6932_s1, 49152, %s6102_s11, [#allocation6], %s5996_s13, %s5996_s13, %s5997_s15  }
  0x36   : > { %s5756_s27 = scalar_lea.hbm %s6907_s3, 4096 }
  0x37   : > { %p5757_p1 = scmp.ne.s32.totalorder %s6907_s3, %s5756_s27  ;;  %p5763_p10 = scmp.lt.u32.totalorder %s5756_s27, %s6907_s3 }
  0x39   : > { %p5759_p4 = pnand %p5757_p1, %p6123_p13 }
  0x3b   : > { %p5760_p6 = pneg %p5759_p4 }
  0x3d   : > { %p5765_p3 = pnand %p5763_p10, %p5760_p6 }
  0x3f   : > { %5768 = shalt.err (!%p5765_p3)
}
  0x40   : > { %s5769_s11 = scalar_lea.vmem %s6113_s14, 4096  ;;  %p5777_p12 = scmp.lt.s32.totalorder %s6113_s14, %s6113_s14 }
  0x41   : > { %p5770_p5 = scmp.ne.s32.totalorder %s6113_s14, %s5769_s11  ;;  %p5778_p0 = scmp.lt.s32.totalorder %s5769_s11, %s5769_s11 }
  0x43   : > { %p5772_p7 = pnand %p5770_p5, %p6123_p13  ;;  %p5779_p1 = por %p5778_p0, %p5777_p12 }
  0x45   : > { %p5773_p9 = pneg %p5772_p7 }
  0x47   : > { %p5780_p4 = pnand %p5779_p1, %p5773_p9 }
  0x49   : > { %5783 = shalt.err (!%p5780_p4)
}
  0x4a   : > { %s5998_s8 = smov 512   ;;  %s5999_s21 = smov 32  }
  0x4b   : > { %5027 = dma.hbm_to_vmem [thread:$0]  (!%p6109_p11), %s6907_s3, 4096, %s6113_s14, [#allocation9], %s5998_s8, %s5998_s8, %s5999_s21  }
  0x4c   : > { %s6000_s16 = smov [#allocation7]   ;;  %s6001_s18 = smov [#allocation10]  }
  0x4d   : > { %s249_s17 = sshll.u32 %s6000_s16, 4  ;;  %s280_s19 = sshll.u32 %s6001_s18, 4  ;;  %s250_s17 = int_to_ptr.vmem [resolvable:$true] %s249_s17  ;;  %s6170_s19 = int_to_ptr.vmem [resolvable:$true] %s280_s19 }
  0x4e   : > { %s5784_s10 = scalar_lea.hbm %s6906_s2, 192 }
  0x4f   : > { %p5785_p6 = scmp.ne.s32.totalorder %s6906_s2, %s5784_s10  ;;  %p5791_p5 = scmp.lt.u32.totalorder %s5784_s10, %s6906_s2 }
  0x51   : > { %p5787_p10 = pnand %p5785_p6, %p6123_p13 }
  0x53   : > { %p5788_p3 = pneg %p5787_p10 }
  0x55   : > { %p5793_p7 = pnand %p5791_p5, %p5788_p3 }
  0x57   : > { %5796 = shalt.err (!%p5793_p7)
}
  0x58   : > { %s5797_s15 = scalar_lea.vmem %s250_s17, 192  ;;  %p5805_p1 = scmp.lt.s32.totalorder %s250_s17, %s250_s17 }
  0x59   : > { %p5798_p9 = scmp.ne.s32.totalorder %s250_s17, %s5797_s15  ;;  %p5806_p4 = scmp.lt.s32.totalorder %s5797_s15, %s5797_s15 }
  0x5b   : > { %p5800_p12 = pnand %p5798_p9, %p6123_p13  ;;  %p5807_p8 = por %p5806_p4, %p5805_p1 }
  0x5d   : > { %p5801_p0 = pneg %p5800_p12 }
  0x5f   : > { %p5808_p2 = pnand %p5807_p8, %p5801_p0 }
  0x61   : > { %5811 = shalt.err (!%p5808_p2)
}
  0x62   : > { %5024 = dma.hbm_to_vmem [thread:$0]  (!%p6109_p11), %s6906_s2, 192, %s250_s17, [#allocation6]  }
  0x63   : > { %s5812_s28 = scalar_lea.hbm %s6908_s4, 4096 }
  0x64   : > { %p5813_p6 = scmp.ne.s32.totalorder %s6908_s4, %s5812_s28  ;;  %p5819_p2 = scmp.lt.u32.totalorder %s5812_s28, %s6908_s4 }
  0x66   : > { %p5815_p10 = pnand %p5813_p6, %p6123_p13 }
  0x68   : > { %p5816_p3 = pneg %p5815_p10 }
  0x6a   : > { %p5821_p8 = pnand %p5819_p2, %p5816_p3 }
  0x6c   : > { %5824 = shalt.err (!%p5821_p8)
}
  0x6d   : > { %s5825_s17 = scalar_lea.vmem %s6170_s19, 4096  ;;  %p5833_p12 = scmp.lt.s32.totalorder %s6170_s19, %s6170_s19 }
  0x6e   : > { %p5826_p5 = scmp.ne.s32.totalorder %s6170_s19, %s5825_s17  ;;  %p5834_p0 = scmp.lt.s32.totalorder %s5825_s17, %s5825_s17 }
  0x70   : > { %p5828_p7 = pnand %p5826_p5, %p6123_p13  ;;  %p5835_p1 = por %p5834_p0, %p5833_p12 }
  0x72   : > { %p5829_p9 = pneg %p5828_p7 }
  0x74   : > { %p5836_p4 = pnand %p5835_p1, %p5829_p9 }
  0x76   : > { %5839 = shalt.err (!%p5836_p4)
}
  0x77   : > { %5030 = dma.hbm_to_vmem [thread:$0]  (!%p6109_p11), %s6908_s4, 4096, %s6170_s19, [#allocation9], %s5998_s8, %s5998_s8, %s5999_s21  }
  0x78   : > { %s40_s12 = sadd.s32 1, %s5988_s25  ;;  %s49_s20 = sadd.s32 1, %s5980_s23 }
  0x79   : > { %p42_p13 = scmp.ge.s32.totalorder %s40_s12, 2  ;;  %p56_p6 = scmp.ne.s32.totalorder %s5980_s23, %s5976_s22 }
  0x7a   : > { %p57_p10 = scmp.eq.s32.totalorder %s5992_s26, 0  ;;  %p5046_p3 = scmp.lt.s32.totalorder %s5992_s26, 2 }
  0x7b   : > { %s6966_s12 = smov (%p42_p13, %s40_s12), 0  ;;  %p6934_p8 = scmp.ne.s32.totalorder %s6926_s30, 0 }
  0x7c   : > { %p58_p2 = por %p57_p10, %p56_p6  ;;  %s44_s18 = ssub.s32 %s5988_s25, %s6966_s12 }
  0x7d   : > { %p6226_p5 = por %p6934_p8, %p56_p6  ;;  %s294_s27 = sand.u32 1, %s5980_s23  }
  0x7e   : > { %p47_p7 = scmp.eq.s32.totalorder %s44_s18, 0  ;;  %s4318_s8 = sshll.u32 %s294_s27, 7 }
  0x7f   : > { %s4769_s21 = sshll.u32 %s5988_s25, 11  ;;  %s298_s30 = scalar_lea.vmem [#allocation2], %s4318_s8 }
  0x80   : > { %s6235_s19 = scalar_select %p47_p7, %s5980_s23, %s49_s20  }
  0x81   : > { %s6240_s11 = scalar_lea.hbm %s6904_s0, %s4769_s21  ;;  %s308_s13 = sshll.u32 %s298_s30, 4  ;;  %s6248_s13 = int_to_ptr.vmem [resolvable:$true] %s308_s13 }
  0x82   : > { %p6244_p11 = pnand %p5046_p3, %p58_p2  ;;  %s6250_s17 = scalar_lea.sflag [#allocation3], %s294_s27 }
  0x83   : > { %s5840_s15 = scalar_lea.hbm %s6240_s11, 2048  ;;  %s5845_s18 = scalar_lea.hbm %s6904_s0, 4096 }
  0x84   : > { %p5841_p9 = scmp.ne.s32.totalorder %s6240_s11, %s5840_s15  ;;  %p5842_p12 = pneg %p6244_p11 }
  0x85   : > { %p5846_p4 = scmp.lt.u32.totalorder %s6240_s11, %s6904_s0  ;;  %p5847_p13 = scmp.lt.u32.totalorder %s5845_s18, %s5840_s15 }
  0x86   : > { %p5843_p0 = pnand %p5842_p12, %p5841_p9  ;;  %p5849_p10 = scmp.lt.u32.totalorder %s5840_s15, %s6240_s11 }
  0x87   : > { %p5848_p6 = por %p5847_p13, %p5846_p4 }
  0x88   : > { %p5844_p1 = pneg %p5843_p0 }
  0x89   : > { %p5850_p3 = por %p5849_p10, %p5848_p6 }
  0x8b   : > { %p5851_p2 = pnand %p5850_p3, %p5844_p1 }
  0x8d   : > { %5854 = shalt.err (!%p5851_p2)
}
  0x8e   : > { %s5855_s27 = scalar_lea.vmem %s6248_s13, 2048  ;;  %s6002_s28 = smov [#allocation2]  }
  0x8f   : > { %p5856_p8 = scmp.ne.s32.totalorder %s6248_s13, %s5855_s27  ;;  %s5860_s10 = sshll.u32 %s6002_s28, 4  ;;  %s5861_s10 = int_to_ptr.vmem [resolvable:$false] %s5860_s10 }
  0x90   : > { %s5862_s30 = scalar_lea.vmem %s5861_s10, 4096  ;;  %p5863_p0 = scmp.lt.s32.totalorder %s6248_s13, %s5861_s10 }
  0x91   : > { %p5858_p7 = pnand %p5856_p8, %p5842_p12  ;;  %p5864_p4 = scmp.lt.s32.totalorder %s5862_s30, %s5855_s27 }
  0x93   : > { %p5859_p9 = pneg %p5858_p7  ;;  %p5865_p13 = por %p5864_p4, %p5863_p0 }
  0x95   : > { %p5866_p6 = pnand %p5865_p13, %p5859_p9 }
  0x97   : > { %5869 = shalt.err (!%p5866_p6)
}
  0x98   : > { %s6003_s15 = smov 256   ;;  %s6004_s1 = smov 16  }
  0x99   : > { %5034 = dma.hbm_to_vmem [thread:$0]  (!%p6244_p11), %s6240_s11, 2048, %s6248_s13, %s6250_s17, %s6003_s15, %s6003_s15, %s6004_s1  }
  0x9a   : > { %p6937_p12 = scmp.ne.s32.totalorder %s6930_s9, 0 }
  0x9c   : > { %320 = sbr.rel (%p6937_p12) target bundleno = 814 (0x32e), region = 40 }
  0xa3   : > { %s6281_s20 = sand.u32 1, %s5976_s22   ;;  %p6938_p1 = scmp.ne.s32.totalorder %s6927_s7, 0 }
  0xa4   : > { %s6284_s18 = sshll.u32 %s6281_s20, 7  ;;  %s323_s8 = scalar_lea.sflag [#allocation3], %s6281_s20 }
  0xa5   : > { %s6288_s21 = scalar_lea.vmem [#allocation2], %s6284_s18 }
  0xa6   : > { %5951 = dma.done.wait (%p6938_p1), %s323_s8, 2048  }
  0xa7   : > { %5953 = vsyncadd (%p6938_p1), %s323_s8, 4294965248  ;;  %p6939_p11 = scmp.ne.s32.totalorder %s6925_s29, 0 }
  0xa9   : > { %5955 = dma.done.wait (%p6939_p11), [#allocation6], 49344  }
  0xaa   : > { %5957 = vsyncadd (%p6939_p11), [#allocation6], 4294917952 }
  0xab   : > { %5959 = dma.done.wait (%p6939_p11), [#allocation9], 8192  }
  0xac   : > { %5961 = vsyncadd (%p6939_p11), [#allocation9], 4294959104  ;;  %v5112_v0 = vld [vmem:[#allocation5 + $0x4] ss:$48 sps:$4 sm:$0xff]   ;;  %v5114_v1 = vld [vmem:[#allocation5 + $0xc] ss:$48 sps:$4 sm:$0xff]  }
  0xad   : > { %2845 = vmatprep.subr.bf16.mxu0 %v5112_v0  ;;  %v5116_v2 = vld [vmem:[#allocation5] ss:$48 sps:$4 sm:$0xff]   ;;  %v5117_v3 = vld [vmem:[#allocation5 + $0x8] ss:$48 sps:$4 sm:$0xff]   ;;  %2991 = vmatprep.subr.bf16.mxu1 %v5114_v1  ;;  %v5118_v4 = vld [vmem:[#allocation5 + $0x64] ss:$48 sps:$4 sm:$0xff]  }
  0xae   : > { %2846 = vmatpush1.bf16.msra.mxu0 %v5116_v2  ;;  %2992 = vmatpush1.bf16.msra.mxu1 %v5117_v3  ;;  %v5120_v5 = vld [vmem:[#allocation5 + $0x6c] ss:$48 sps:$4 sm:$0xff]   ;;  %v5122_v6 = vld [vmem:[#allocation5 + $0x60] ss:$48 sps:$4 sm:$0xff]   ;;  %v5123_v7 = vld [vmem:[#allocation5 + $0x68] ss:$48 sps:$4 sm:$0xff]  }
  0xaf   : > { %2847 = vmatprep.subr.bf16.mxu0 %v5118_v4  ;;  %2993 = vmatprep.subr.bf16.mxu1 %v5120_v5  ;;  %v5124_v8 = vld [vmem:[#allocation5 + $0xc4] ss:$48 sps:$4 sm:$0xff]   ;;  %v5126_v9 = vld [vmem:[#allocation5 + $0xcc] ss:$48 sps:$4 sm:$0xff]   ;;  %v5128_v10 = vld [vmem:[#allocation5 + $0xc0] ss:$48 sps:$4 sm:$0xff]  }
  0xb0   : > { %v5129_v11 = vld [vmem:[#allocation5 + $0xc8] ss:$48 sps:$4 sm:$0xff]   ;;  %v5130_v12 = vld [vmem:[#allocation5 + $0x124] ss:$48 sps:$4 sm:$0xff]   ;;  %v5132_v13 = vld [vmem:[#allocation5 + $0x12c] ss:$48 sps:$4 sm:$0xff]  }
  0xb1   : > { %v5134_v14 = vld [vmem:[#allocation5 + $0x120] ss:$48 sps:$4 sm:$0xff]   ;;  %v5135_v15 = vld [vmem:[#allocation5 + $0x128] ss:$48 sps:$4 sm:$0xff]   ;;  %v5136_v16 = vld [vmem:[#allocation5 + $0x184] ss:$48 sps:$4 sm:$0xff]  }
  0xb2   : > { %2848 = vmatpush1.bf16.msra.mxu0 %v5122_v6  ;;  %2994 = vmatpush1.bf16.msra.mxu1 %v5123_v7  ;;  %v5138_v17 = vld [vmem:[#allocation5 + $0x18c] ss:$48 sps:$4 sm:$0xff]   ;;  %v5140_v18 = vld [vmem:[#allocation5 + $0x180] ss:$48 sps:$4 sm:$0xff]   ;;  %v5141_v19 = vld [vmem:[#allocation5 + $0x188] ss:$48 sps:$4 sm:$0xff]  }
  0xb3   : > { %2849 = vmatprep.subr.bf16.mxu0 %v5124_v8  ;;  %2995 = vmatprep.subr.bf16.mxu1 %v5126_v9  ;;  %v5142_v20 = vld [vmem:[#allocation5 + $0x1e4] ss:$48 sps:$4 sm:$0xff]   ;;  %v5144_v21 = vld [vmem:[#allocation5 + $0x1ec] ss:$48 sps:$4 sm:$0xff]   ;;  %v5146_v22 = vld [vmem:[#allocation5 + $0x1e0] ss:$48 sps:$4 sm:$0xff]  }
  0xb4   : > { %v5147_v23 = vld [vmem:[#allocation5 + $0x1e8] ss:$48 sps:$4 sm:$0xff]   ;;  %v5148_v24 = vld [vmem:[#allocation5 + $0x244] ss:$48 sps:$4 sm:$0xff]   ;;  %v5150_v25 = vld [vmem:[#allocation5 + $0x24c] ss:$48 sps:$4 sm:$0xff]  }
  0xb5   : > { %v5152_v26 = vld [vmem:[#allocation5 + $0x240] ss:$48 sps:$4 sm:$0xff]   ;;  %v5153_v27 = vld [vmem:[#allocation5 + $0x248] ss:$48 sps:$4 sm:$0xff]   ;;  %v5154_v28 = vld [vmem:[#allocation5 + $0x2a4] ss:$48 sps:$4 sm:$0xff]  }
  0xb6   : > { %2850 = vmatpush1.bf16.msra.mxu0 %v5128_v10  ;;  %2996 = vmatpush1.bf16.msra.mxu1 %v5129_v11  ;;  %v5156_v29 = vld [vmem:[#allocation5 + $0x2ac] ss:$48 sps:$4 sm:$0xff]   ;;  %v5158_v30 = vld [vmem:[#allocation5 + $0x2a0] ss:$48 sps:$4 sm:$0xff]   ;;  %v5159_v31 = vld [vmem:[#allocation5 + $0x2a8] ss:$48 sps:$4 sm:$0xff]  }
  0xb7   : > { %2851 = vmatprep.subr.bf16.mxu0 %v5130_v12  ;;  %2997 = vmatprep.subr.bf16.mxu1 %v5132_v13  ;;  %v5160_v32 = vld [vmem:[#allocation5 + $0x304] ss:$48 sps:$4 sm:$0xff]   ;;  %v5162_v33 = vld [vmem:[#allocation5 + $0x30c] ss:$48 sps:$4 sm:$0xff]   ;;  %v5164_v34 = vld [vmem:[#allocation5 + $0x300] ss:$48 sps:$4 sm:$0xff]  }
  0xb8   : > { %v5165_v35 = vld [vmem:[#allocation5 + $0x308] ss:$48 sps:$4 sm:$0xff]   ;;  %v5166_v36 = vld [vmem:[#allocation5 + $0x364] ss:$48 sps:$4 sm:$0xff]   ;;  %v5168_v37 = vld [vmem:[#allocation5 + $0x36c] ss:$48 sps:$4 sm:$0xff]  }
  0xb9   : > { %v5170_v38 = vld [vmem:[#allocation5 + $0x360] ss:$48 sps:$4 sm:$0xff]   ;;  %v5171_v39 = vld [vmem:[#allocation5 + $0x368] ss:$48 sps:$4 sm:$0xff]   ;;  %v5172_v40 = vld [vmem:[#allocation5 + $0x3c4] ss:$48 sps:$4 sm:$0xff]  }
  0xba   : > { %2852 = vmatpush1.bf16.msra.mxu0 %v5134_v14  ;;  %2998 = vmatpush1.bf16.msra.mxu1 %v5135_v15  ;;  %v5174_v41 = vld [vmem:[#allocation5 + $0x3cc] ss:$48 sps:$4 sm:$0xff]   ;;  %v5176_v42 = vld [vmem:[#allocation5 + $0x3c0] ss:$48 sps:$4 sm:$0xff]   ;;  %v5177_v43 = vld [vmem:[#allocation5 + $0x3c8] ss:$48 sps:$4 sm:$0xff]  }
  0xbb   : > { %2853 = vmatprep.subr.bf16.mxu0 %v5136_v16  ;;  %2999 = vmatprep.subr.bf16.mxu1 %v5138_v17  ;;  %v5178_v44 = vld [vmem:[#allocation5 + $0x424] ss:$48 sps:$4 sm:$0xff]   ;;  %v5180_v45 = vld [vmem:[#allocation5 + $0x42c] ss:$48 sps:$4 sm:$0xff]   ;;  %v5182_v46 = vld [vmem:[#allocation5 + $0x420] ss:$48 sps:$4 sm:$0xff]  }
  0xbc   : > { %v6303_v47 = vld [vmem:[%s6288_s21 + $0x4] ss:$16 sps:$4 sm:$0xff]   ;;  %v5183_v48 = vld [vmem:[#allocation5 + $0x428] ss:$48 sps:$4 sm:$0xff]   ;;  %v5186_v50 = vld [vmem:[#allocation5 + $0x48c] ss:$48 sps:$4 sm:$0xff]  }
  0xbd   : > { %v5184_v49 = vld [vmem:[#allocation5 + $0x484] ss:$48 sps:$4 sm:$0xff]   ;;  %2877 = vmatprep.mubr.bf16.mxu0 %v6303_v47  ;;  %3023 = vmatprep.mubr.bf16.mxu1 %v6303_v47  ;;  %v5188_v51 = vld [vmem:[#allocation5 + $0x480] ss:$48 sps:$4 sm:$0xff]   ;;  %v5189_v52 = vld [vmem:[#allocation5 + $0x488] ss:$48 sps:$4 sm:$0xff]  }
  0xbe   : > { %2854 = vmatpush1.bf16.msra.mxu0 %v5140_v18  ;;  %3000 = vmatpush1.bf16.msra.mxu1 %v5141_v19  ;;  %v5190_v53 = vld [vmem:[#allocation5 + $0x4e4] ss:$48 sps:$4 sm:$0xff]   ;;  %v5192_v54 = vld [vmem:[#allocation5 + $0x4ec] ss:$48 sps:$4 sm:$0xff]   ;;  %v5194_v55 = vld [vmem:[#allocation5 + $0x4e0] ss:$48 sps:$4 sm:$0xff]  }
  0xbf   : > { %2855 = vmatprep.subr.bf16.mxu0 %v5142_v20  ;;  %3001 = vmatprep.subr.bf16.mxu1 %v5144_v21  ;;  %v5195_v56 = vld [vmem:[#allocation5 + $0x4e8] ss:$48 sps:$4 sm:$0xff]   ;;  %v5196_v57 = vld [vmem:[#allocation5 + $0x544] ss:$48 sps:$4 sm:$0xff]   ;;  %v5198_v58 = vld [vmem:[#allocation5 + $0x54c] ss:$48 sps:$4 sm:$0xff]  }
  0xc0   : > { %v5200_v59 = vld [vmem:[#allocation5 + $0x540] ss:$48 sps:$4 sm:$0xff]   ;;  %v5201_v60 = vld [vmem:[#allocation5 + $0x548] ss:$48 sps:$4 sm:$0xff]   ;;  %v5202_v61 = vld [vmem:[#allocation5 + $0x5a4] ss:$48 sps:$4 sm:$0xff]  }
  0xc1   : > { %v5204_v62 = vld [vmem:[#allocation5 + $0x5ac] ss:$48 sps:$4 sm:$0xff]   ;;  %v5206_v63 = vld [vmem:[#allocation5 + $0x5a0] ss:$48 sps:$4 sm:$0xff]   ;;  %v5207_v0 = vld [vmem:[#allocation5 + $0x5a8] ss:$48 sps:$4 sm:$0xff]  }
  0xc2   : > { %2856 = vmatpush1.bf16.msra.mxu0 %v5146_v22  ;;  %3002 = vmatpush1.bf16.msra.mxu1 %v5147_v23  ;;  %v5212_v1 = vld [vmem:[#allocation5 + $0x604] ss:$48 sps:$4 sm:$0xff]   ;;  %v5215_v2 = vld [vmem:[#allocation5 + $0x60c] ss:$48 sps:$4 sm:$0xff]   ;;  %v5210_v3 = vld [vmem:[#allocation5 + $0x600] ss:$48 sps:$4 sm:$0xff]  }
  0xc3   : > { %2857 = vmatprep.subr.bf16.mxu0 %v5148_v24  ;;  %3003 = vmatprep.subr.bf16.mxu1 %v5150_v25  ;;  %v5213_v4 = vld [vmem:[#allocation5 + $0x608] ss:$48 sps:$4 sm:$0xff]   ;;  %v6308_v5 = vld [vmem:[%s6288_s21] ss:$16 sps:$4 sm:$0xff]   ;;  %v5219_v6 = vld [vmem:[#allocation5 + $0x664] ss:$48 sps:$4 sm:$0xff]  }
  0xc4   : > { %v5222_v7 = vld [vmem:[#allocation5 + $0x66c] ss:$48 sps:$4 sm:$0xff]   ;;  %v5217_v8 = vld [vmem:[#allocation5 + $0x660] ss:$48 sps:$4 sm:$0xff]   ;;  %v5220_v9 = vld [vmem:[#allocation5 + $0x668] ss:$48 sps:$4 sm:$0xff]  }
  0xc5   : > { %v5225_v10 = vld [vmem:[#allocation5 + $0x6c4] ss:$48 sps:$4 sm:$0xff]   ;;  %v5228_v11 = vld [vmem:[#allocation5 + $0x6cc] ss:$48 sps:$4 sm:$0xff]   ;;  %v5223_v12 = vld [vmem:[#allocation5 + $0x6c0] ss:$48 sps:$4 sm:$0xff]  }
  0xc6   : > { %2858 = vmatpush1.bf16.msra.mxu0 %v5152_v26  ;;  %3004 = vmatpush1.bf16.msra.mxu1 %v5153_v27  ;;  %v5226_v13 = vld [vmem:[#allocation5 + $0x6c8] ss:$48 sps:$4 sm:$0xff]   ;;  %v6313_v14 = vld [vmem:[%s6288_s21 + $0x24] ss:$16 sps:$4 sm:$0xff]   ;;  %v6316_v15 = vld [vmem:[%s6288_s21 + $0x20] ss:$16 sps:$4 sm:$0xff]  }
  0xc7   : > { %2859 = vmatprep.subr.bf16.mxu0 %v5154_v28  ;;  %3005 = vmatprep.subr.bf16.mxu1 %v5156_v29  ;;  %v5231_v16 = vld [vmem:[#allocation5 + $0x724] ss:$48 sps:$4 sm:$0xff]   ;;  %v5234_v17 = vld [vmem:[#allocation5 + $0x72c] ss:$48 sps:$4 sm:$0xff]   ;;  %v5229_v18 = vld [vmem:[#allocation5 + $0x720] ss:$48 sps:$4 sm:$0xff]  }
  0xc8   : > { %v5232_v19 = vld [vmem:[#allocation5 + $0x728] ss:$48 sps:$4 sm:$0xff]   ;;  %v5237_v20 = vld [vmem:[#allocation5 + $0x784] ss:$48 sps:$4 sm:$0xff]   ;;  %v5240_v21 = vld [vmem:[#allocation5 + $0x78c] ss:$48 sps:$4 sm:$0xff]  }
  0xc9   : > { %v5235_v22 = vld [vmem:[#allocation5 + $0x780] ss:$48 sps:$4 sm:$0xff]   ;;  %v6323_v23 = vld [vmem:[%s6288_s21 + $0x44] ss:$16 sps:$4 sm:$0xff]   ;;  %v5238_v24 = vld [vmem:[#allocation5 + $0x788] ss:$48 sps:$4 sm:$0xff]  }
  0xca   : > { %2860 = vmatpush1.bf16.msra.mxu0 %v5158_v30  ;;  %3006 = vmatpush1.bf16.msra.mxu1 %v5159_v31  ;;  %v6326_v25 = vld [vmem:[%s6288_s21 + $0x40] ss:$16 sps:$4 sm:$0xff]   ;;  %v5243_v26 = vld [vmem:[#allocation5 + $0x7e4] ss:$48 sps:$4 sm:$0xff]   ;;  %v5246_v27 = vld [vmem:[#allocation5 + $0x7ec] ss:$48 sps:$4 sm:$0xff]  }
  0xcb   : > { %2861 = vmatprep.subr.bf16.mxu0 %v5160_v32  ;;  %3007 = vmatprep.subr.bf16.mxu1 %v5162_v33  ;;  %v5241_v28 = vld [vmem:[#allocation5 + $0x7e0] ss:$48 sps:$4 sm:$0xff]   ;;  %v5244_v29 = vld [vmem:[#allocation5 + $0x7e8] ss:$48 sps:$4 sm:$0xff]   ;;  %v5249_v30 = vld [vmem:[#allocation5 + $0x844] ss:$48 sps:$4 sm:$0xff]  }
  0xcc   : > { %v6333_v31 = vld [vmem:[%s6288_s21 + $0x64] ss:$16 sps:$4 sm:$0xff]   ;;  %v5252_v32 = vld [vmem:[#allocation5 + $0x84c] ss:$48 sps:$4 sm:$0xff]   ;;  %v5247_v33 = vld [vmem:[#allocation5 + $0x840] ss:$48 sps:$4 sm:$0xff]  }
  0xcd   : > { %s6667_s29 = scalar_lea.vmem [#allocation11], %s6284_s18  ;;  %s4802_s7 = sshll.u32 %s5984_s24, 11 }
  0xce   : > { %2862 = vmatpush1.bf16.msra.mxu0 %v5164_v34  ;;  %3008 = vmatpush1.bf16.msra.mxu1 %v5165_v35  ;;  %v5250_v34 = vld [vmem:[#allocation5 + $0x848] ss:$48 sps:$4 sm:$0xff]   ;;  %v6338_v35 = vld [vmem:[%s6288_s21 + $0x60] ss:$16 sps:$4 sm:$0xff]   ;;  %s4127_s9 = sshll.u32 %s6667_s29, 4  ;;  %s6742_s14 = scalar_lea.hbm %s6909_s5, %s4802_s7  ;;  %s6744_s9 = int_to_ptr.vmem [resolvable:$true] %s4127_s9 }
  0xcf   : > { %2863 = vmatprep.subr.bf16.mxu0 %v5166_v36  ;;  %3009 = vmatprep.subr.bf16.mxu1 %v5168_v37  ;;  %v5255_v36 = vld [vmem:[#allocation5 + $0x8a4] ss:$48 sps:$4 sm:$0xff]   ;;  %v5258_v37 = vld [vmem:[#allocation5 + $0x8ac] ss:$48 sps:$4 sm:$0xff]   ;;  %s4106_s17 = scalar_lea.sflag [#allocation4], %s6281_s20  ;;  %s5870_s27 = scalar_lea.vmem %s6744_s9, 2048 }
  0xd0   : > { %p5871_p10 = scmp.ne.s32.totalorder %s6744_s9, %s5870_s27  ;;  %s6005_s28 = smov [#allocation11]  }
  0xd1   : > { %s5874_s10 = sshll.u32 %s6005_s28, 4  ;;  %s5875_s10 = int_to_ptr.vmem [resolvable:$false] %s5874_s10 }
  0xd2   : > { %2864 = vmatpush1.bf16.msra.mxu0 %v5170_v38  ;;  %3010 = vmatpush1.bf16.msra.mxu1 %v5171_v39  ;;  %v5253_v38 = vld [vmem:[#allocation5 + $0x8a0] ss:$48 sps:$4 sm:$0xff]   ;;  %v5256_v39 = vld [vmem:[#allocation5 + $0x8a8] ss:$48 sps:$4 sm:$0xff]   ;;  %p5872_p3 = pnand %p5871_p10, %p6226_p5  ;;  %s5876_s30 = scalar_lea.vmem %s5875_s10, 4096 }
  0xd3   : > { %2865 = vmatprep.subr.bf16.mxu0 %v5172_v40  ;;  %3011 = vmatprep.subr.bf16.mxu1 %v5174_v41  ;;  %v6343_v40 = vld [vmem:[%s6288_s21 + $0xc] ss:$16 sps:$4 sm:$0xff]   ;;  %v5261_v41 = vld [vmem:[#allocation5 + $0x904] ss:$48 sps:$4 sm:$0xff]   ;;  %p5877_p8 = scmp.lt.s32.totalorder %s6744_s9, %s5875_s10  ;;  %p5878_p7 = scmp.lt.s32.totalorder %s5876_s30, %s5870_s27 }
  0xd4   : > { %p5873_p2 = pneg %p5872_p3 }
  0xd5   : > { %p5879_p9 = por %p5878_p7, %p5877_p8 }
  0xd6   : > { %2866 = vmatpush1.bf16.msra.mxu0 %v5176_v42  ;;  %3012 = vmatpush1.bf16.msra.mxu1 %v5177_v43  ;;  %v5264_v42 = vld [vmem:[#allocation5 + $0x90c] ss:$48 sps:$4 sm:$0xff]   ;;  %v5259_v43 = vld [vmem:[#allocation5 + $0x900] ss:$48 sps:$4 sm:$0xff]  }
  0xd7   : > { %2867 = vmatprep.subr.bf16.mxu0 %v5178_v44  ;;  %3013 = vmatprep.subr.bf16.mxu1 %v5180_v45  ;;  %v5262_v44 = vld [vmem:[#allocation5 + $0x908] ss:$48 sps:$4 sm:$0xff]   ;;  %v5267_v45 = vld [vmem:[#allocation5 + $0x964] ss:$48 sps:$4 sm:$0xff]   ;;  %p5880_p0 = pnand %p5879_p9, %p5873_p2 }
  0xda   : > { %2868 = vmatpush1.bf16.msra.mxu0 %v5182_v46  ;;  %3014 = vmatpush1.bf16.msra.mxu1 %v5183_v48  ;;  %v5270_v46 = vld [vmem:[#allocation5 + $0x96c] ss:$48 sps:$4 sm:$0xff]   ;;  %v5265_v48 = vld [vmem:[#allocation5 + $0x960] ss:$48 sps:$4 sm:$0xff]  }
  0xdb   : > { %2869 = vmatprep.subr.bf16.mxu0 %v5184_v49  ;;  %3015 = vmatprep.subr.bf16.mxu1 %v5186_v50  ;;  %v5268_v49 = vld [vmem:[#allocation5 + $0x968] ss:$48 sps:$4 sm:$0xff]   ;;  %v5276_v50 = vld [vmem:[#allocation5 + $0x9c4] ss:$48 sps:$4 sm:$0xff]  }
  0xde   : > { %2870 = vmatpush1.bf16.msra.mxu0 %v5188_v51  ;;  %3016 = vmatpush1.bf16.msra.mxu1 %v5189_v52  ;;  %v5279_v51 = vld [vmem:[#allocation5 + $0x9cc] ss:$48 sps:$4 sm:$0xff]   ;;  %v5274_v52 = vld [vmem:[#allocation5 + $0x9c0] ss:$48 sps:$4 sm:$0xff]  }
  0xdf   : > { %2871 = vmatprep.subr.bf16.mxu0 %v5190_v53  ;;  %3017 = vmatprep.subr.bf16.mxu1 %v5192_v54  ;;  %v5277_v53 = vld [vmem:[#allocation5 + $0x9c8] ss:$48 sps:$4 sm:$0xff]   ;;  %v5282_v54 = vld [vmem:[#allocation5 + $0xa24] ss:$48 sps:$4 sm:$0xff]  }
  0xe2   : > { %2872 = vmatpush1.bf16.msra.mxu0 %v5194_v55  ;;  %3018 = vmatpush1.bf16.msra.mxu1 %v5195_v56  ;;  %v5285_v55 = vld [vmem:[#allocation5 + $0xa2c] ss:$48 sps:$4 sm:$0xff]   ;;  %v5280_v56 = vld [vmem:[#allocation5 + $0xa20] ss:$48 sps:$4 sm:$0xff]  }
  0xe3   : > { %2873 = vmatprep.subr.bf16.mxu0 %v5196_v57  ;;  %3019 = vmatprep.subr.bf16.mxu1 %v5198_v58  ;;  %v5283_v57 = vld [vmem:[#allocation5 + $0xa28] ss:$48 sps:$4 sm:$0xff]   ;;  %v5291_v58 = vld [vmem:[#allocation5 + $0xa84] ss:$48 sps:$4 sm:$0xff]  }
  0xe6   : > { %2874 = vmatpush1.bf16.msra.mxu0 %v5200_v59  ;;  %3020 = vmatpush1.bf16.msra.mxu1 %v5201_v60  ;;  %v5294_v59 = vld [vmem:[#allocation5 + $0xa8c] ss:$48 sps:$4 sm:$0xff]   ;;  %v5289_v60 = vld [vmem:[#allocation5 + $0xa80] ss:$48 sps:$4 sm:$0xff]  }
  0xe7   : > { %2875 = vmatprep.subr.bf16.mxu0 %v5202_v61  ;;  %3021 = vmatprep.subr.bf16.mxu1 %v5204_v62  ;;  %v5292_v61 = vld [vmem:[#allocation5 + $0xa88] ss:$48 sps:$4 sm:$0xff]   ;;  %v5297_v62 = vld [vmem:[#allocation5 + $0xae4] ss:$48 sps:$4 sm:$0xff]  }
  0xea   : > { %2876 = vmatpush1.bf16.msra.mxu0 %v5206_v63  ;;  %3022 = vmatpush1.bf16.msra.mxu1 %v5207_v0  ;;  %v5300_v63 = vld [vmem:[#allocation5 + $0xaec] ss:$48 sps:$4 sm:$0xff]   ;;  %v5295_v0 = vld [vmem:[#allocation5 + $0xae0] ss:$48 sps:$4 sm:$0xff]  }
  0xeb   : > { %2918 = vmatprep.subr.bf16.mxu0 %v5212_v1  ;;  %3064 = vmatprep.subr.bf16.mxu1 %v5215_v2  ;;  %v5298_v1 = vld [vmem:[#allocation5 + $0xae8] ss:$48 sps:$4 sm:$0xff]   ;;  %v5306_v2 = vld [vmem:[#allocation5 + $0xb44] ss:$48 sps:$4 sm:$0xff]  }
  0xed   : > { %2878 = vmatmul.mubr.bf16.vlgmr.msra.gmra.mrb[0].mxu0 %v6308_v5  ;;  %3024 = vmatmul.mubr.bf16.vlgmr.msra.gmra.mrb[0].mxu1 %v6308_v5 }
  0xee   : > { %2919 = vmatpush1.bf16.msra.mxu0 %v5210_v3  ;;  %3065 = vmatpush1.bf16.msra.mxu1 %v5213_v4  ;;  %v5309_v3 = vld [vmem:[#allocation5 + $0xb4c] ss:$48 sps:$4 sm:$0xff]   ;;  %v5304_v4 = vld [vmem:[#allocation5 + $0xb40] ss:$48 sps:$4 sm:$0xff]  }
  0xef   : > { %2920 = vmatprep.subr.bf16.mxu0 %v5219_v6  ;;  %3066 = vmatprep.subr.bf16.mxu1 %v5222_v7  ;;  %v5307_v6 = vld [vmem:[#allocation5 + $0xb48] ss:$48 sps:$4 sm:$0xff]   ;;  %v5312_v7 = vld [vmem:[#allocation5 + $0xba4] ss:$48 sps:$4 sm:$0xff]  }
  0xf0   : > { %2887 = vmatprep.mubr.bf16.mxu0 %v6313_v14  ;;  %3033 = vmatprep.mubr.bf16.mxu1 %v6313_v14 }
  0xf2   : > { %2921 = vmatpush1.bf16.msra.mxu0 %v5217_v8  ;;  %3067 = vmatpush1.bf16.msra.mxu1 %v5220_v9  ;;  %v5315_v8 = vld [vmem:[#allocation5 + $0xbac] ss:$48 sps:$4 sm:$0xff]   ;;  %v5310_v9 = vld [vmem:[#allocation5 + $0xba0] ss:$48 sps:$4 sm:$0xff]  }
  0xf3   : > { %2922 = vmatprep.subr.bf16.mxu0 %v5225_v10  ;;  %3068 = vmatprep.subr.bf16.mxu1 %v5228_v11  ;;  %v5313_v10 = vld [vmem:[#allocation5 + $0xba8] ss:$48 sps:$4 sm:$0xff]   ;;  %v5321_v11 = vld [vmem:[#allocation5 + $0x14] ss:$48 sps:$4 sm:$0xff]  }
  0xf5   : > { %2888 = vmatmul.mubr.bf16.gmra.mrb[4].mxu0 %v6316_v15  ;;  %3034 = vmatmul.mubr.bf16.gmra.mrb[4].mxu1 %v6316_v15 }
  0xf6   : > { %2923 = vmatpush1.bf16.msra.mxu0 %v5223_v12  ;;  %3069 = vmatpush1.bf16.msra.mxu1 %v5226_v13  ;;  %v5324_v12 = vld [vmem:[#allocation5 + $0x1c] ss:$48 sps:$4 sm:$0xff]   ;;  %v6348_v13 = vld [vmem:[%s6288_s21 + $0x8] ss:$16 sps:$4 sm:$0xff]  }
  0xf7   : > { %2924 = vmatprep.subr.bf16.mxu0 %v5231_v16  ;;  %3070 = vmatprep.subr.bf16.mxu1 %v5234_v17  ;;  %v5319_v16 = vld [vmem:[#allocation5 + $0x10] ss:$48 sps:$4 sm:$0xff]   ;;  %v5322_v17 = vld [vmem:[#allocation5 + $0x18] ss:$48 sps:$4 sm:$0xff]  }
  0xf8   : > { %2897 = vmatprep.mubr.bf16.mxu0 %v6323_v23  ;;  %3043 = vmatprep.mubr.bf16.mxu1 %v6323_v23 }
  0xfa   : > { %2925 = vmatpush1.bf16.msra.mxu0 %v5229_v18  ;;  %3071 = vmatpush1.bf16.msra.mxu1 %v5232_v19  ;;  %v5327_v18 = vld [vmem:[#allocation5 + $0x74] ss:$48 sps:$4 sm:$0xff]   ;;  %v5330_v19 = vld [vmem:[#allocation5 + $0x7c] ss:$48 sps:$4 sm:$0xff]  }
  0xfb   : > { %2926 = vmatprep.subr.bf16.mxu0 %v5237_v20  ;;  %3072 = vmatprep.subr.bf16.mxu1 %v5240_v21  ;;  %v6351_v20 = vld [vmem:[%s6288_s21 + $0x2c] ss:$16 sps:$4 sm:$0xff]   ;;  %v5325_v21 = vld [vmem:[#allocation5 + $0x70] ss:$48 sps:$4 sm:$0xff]  }
  0xfd   : > { %2898 = vmatmul.mubr.bf16.gmra.mrb[8].mxu0 %v6326_v25  ;;  %3044 = vmatmul.mubr.bf16.gmra.mrb[8].mxu1 %v6326_v25 }
  0xfe   : > { %2927 = vmatpush1.bf16.msra.mxu0 %v5235_v22  ;;  %3073 = vmatpush1.bf16.msra.mxu1 %v5238_v24  ;;  %v5328_v22 = vld [vmem:[#allocation5 + $0x78] ss:$48 sps:$4 sm:$0xff]   ;;  %v5336_v24 = vld [vmem:[#allocation5 + $0xd4] ss:$48 sps:$4 sm:$0xff]  }
  0xff   : > { %2928 = vmatprep.subr.bf16.mxu0 %v5243_v26  ;;  %3074 = vmatprep.subr.bf16.mxu1 %v5246_v27  ;;  %v5339_v26 = vld [vmem:[#allocation5 + $0xdc] ss:$48 sps:$4 sm:$0xff]   ;;  %v6358_v27 = vld [vmem:[%s6288_s21 + $0x28] ss:$16 sps:$4 sm:$0xff]  }
 0x100   : > { %2907 = vmatprep.mubr.bf16.mxu0 %v6333_v31  ;;  %3053 = vmatprep.mubr.bf16.mxu1 %v6333_v31 }
 0x102   : > { %2929 = vmatpush1.bf16.msra.mxu0 %v5241_v28  ;;  %3075 = vmatpush1.bf16.msra.mxu1 %v5244_v29  ;;  %v5334_v28 = vld [vmem:[#allocation5 + $0xd0] ss:$48 sps:$4 sm:$0xff]   ;;  %v5337_v29 = vld [vmem:[#allocation5 + $0xd8] ss:$48 sps:$4 sm:$0xff]  }
 0x103   : > { %2930 = vmatprep.subr.bf16.mxu0 %v5249_v30  ;;  %3076 = vmatprep.subr.bf16.mxu1 %v5252_v32  ;;  %v5342_v30 = vld [vmem:[#allocation5 + $0x134] ss:$48 sps:$4 sm:$0xff]   ;;  %v5345_v32 = vld [vmem:[#allocation5 + $0x13c] ss:$48 sps:$4 sm:$0xff]  }
 0x105   : > { %2908 = vmatmul.mubr.bf16.gmra.mrb[12].mxu0 %v6338_v35  ;;  %3054 = vmatmul.mubr.bf16.gmra.mrb[12].mxu1 %v6338_v35 }
 0x106   : > { %2931 = vmatpush1.bf16.msra.mxu0 %v5247_v33  ;;  %3077 = vmatpush1.bf16.msra.mxu1 %v5250_v34  ;;  %v6361_v33 = vld [vmem:[%s6288_s21 + $0x4c] ss:$16 sps:$4 sm:$0xff]   ;;  %v5340_v34 = vld [vmem:[#allocation5 + $0x130] ss:$48 sps:$4 sm:$0xff]  }
 0x107   : > { %2932 = vmatprep.subr.bf16.mxu0 %v5255_v36  ;;  %3078 = vmatprep.subr.bf16.mxu1 %v5258_v37  ;;  %v5343_v36 = vld [vmem:[#allocation5 + $0x138] ss:$48 sps:$4 sm:$0xff]   ;;  %v5351_v37 = vld [vmem:[#allocation5 + $0x194] ss:$48 sps:$4 sm:$0xff]  }
 0x108   : > { %2950 = vmatprep.mubr.bf16.mxu0 %v6343_v40  ;;  %3096 = vmatprep.mubr.bf16.mxu1 %v6343_v40 }
 0x10a   : > { %2933 = vmatpush1.bf16.msra.mxu0 %v5253_v38  ;;  %3079 = vmatpush1.bf16.msra.mxu1 %v5256_v39  ;;  %v5354_v38 = vld [vmem:[#allocation5 + $0x19c] ss:$48 sps:$4 sm:$0xff]   ;;  %v6368_v39 = vld [vmem:[%s6288_s21 + $0x48] ss:$16 sps:$4 sm:$0xff]  }
 0x10b   : > { %2934 = vmatprep.subr.bf16.mxu0 %v5261_v41  ;;  %3080 = vmatprep.subr.bf16.mxu1 %v5264_v42  ;;  %v5349_v41 = vld [vmem:[#allocation5 + $0x190] ss:$48 sps:$4 sm:$0xff]   ;;  %v5352_v42 = vld [vmem:[#allocation5 + $0x198] ss:$48 sps:$4 sm:$0xff]  }
 0x10e   : > { %2935 = vmatpush1.bf16.msra.mxu0 %v5259_v43  ;;  %3081 = vmatpush1.bf16.msra.mxu1 %v5262_v44  ;;  %v5357_v43 = vld [vmem:[#allocation5 + $0x1f4] ss:$48 sps:$4 sm:$0xff]   ;;  %v5360_v44 = vld [vmem:[#allocation5 + $0x1fc] ss:$48 sps:$4 sm:$0xff]  }
 0x10f   : > { %2936 = vmatprep.subr.bf16.mxu0 %v5267_v45  ;;  %3082 = vmatprep.subr.bf16.mxu1 %v5270_v46  ;;  %v6371_v45 = vld [vmem:[%s6288_s21 + $0x6c] ss:$16 sps:$4 sm:$0xff]   ;;  %v5355_v46 = vld [vmem:[#allocation5 + $0x1f0] ss:$48 sps:$4 sm:$0xff]  }
 0x112   : > { %2937 = vmatpush1.bf16.msra.mxu0 %v5265_v48  ;;  %3083 = vmatpush1.bf16.msra.mxu1 %v5268_v49  ;;  %v5358_v48 = vld [vmem:[#allocation5 + $0x1f8] ss:$48 sps:$4 sm:$0xff]   ;;  %v5366_v49 = vld [vmem:[#allocation5 + $0x254] ss:$48 sps:$4 sm:$0xff]  }
 0x113   : > { %2938 = vmatprep.subr.bf16.mxu0 %v5276_v50  ;;  %3084 = vmatprep.subr.bf16.mxu1 %v5279_v51  ;;  %v5369_v50 = vld [vmem:[#allocation5 + $0x25c] ss:$48 sps:$4 sm:$0xff]   ;;  %v6378_v51 = vld [vmem:[%s6288_s21 + $0x68] ss:$16 sps:$4 sm:$0xff]  }
 0x116   : > { %2939 = vmatpush1.bf16.msra.mxu0 %v5274_v52  ;;  %3085 = vmatpush1.bf16.msra.mxu1 %v5277_v53  ;;  %v5364_v52 = vld [vmem:[#allocation5 + $0x250] ss:$48 sps:$4 sm:$0xff]   ;;  %v5367_v53 = vld [vmem:[#allocation5 + $0x258] ss:$48 sps:$4 sm:$0xff]  }
 0x117   : > { %2940 = vmatprep.subr.bf16.mxu0 %v5282_v54  ;;  %3086 = vmatprep.subr.bf16.mxu1 %v5285_v55  ;;  %v5372_v54 = vld [vmem:[#allocation5 + $0x2b4] ss:$48 sps:$4 sm:$0xff]   ;;  %v5375_v55 = vld [vmem:[#allocation5 + $0x2bc] ss:$48 sps:$4 sm:$0xff]  }
 0x11a   : > { %2941 = vmatpush1.bf16.msra.mxu0 %v5280_v56  ;;  %3087 = vmatpush1.bf16.msra.mxu1 %v5283_v57  ;;  %v5370_v56 = vld [vmem:[#allocation5 + $0x2b0] ss:$48 sps:$4 sm:$0xff]   ;;  %v5373_v57 = vld [vmem:[#allocation5 + $0x2b8] ss:$48 sps:$4 sm:$0xff]  }
 0x11b   : > { %2942 = vmatprep.subr.bf16.mxu0 %v5291_v58  ;;  %3088 = vmatprep.subr.bf16.mxu1 %v5294_v59  ;;  %v5378_v58 = vld [vmem:[#allocation5 + $0x314] ss:$48 sps:$4 sm:$0xff]   ;;  %v5381_v59 = vld [vmem:[#allocation5 + $0x31c] ss:$48 sps:$4 sm:$0xff]  }
 0x11e   : > { %2943 = vmatpush1.bf16.msra.mxu0 %v5289_v60  ;;  %3089 = vmatpush1.bf16.msra.mxu1 %v5292_v61  ;;  %v5376_v60 = vld [vmem:[#allocation5 + $0x310] ss:$48 sps:$4 sm:$0xff]   ;;  %v5379_v61 = vld [vmem:[#allocation5 + $0x318] ss:$48 sps:$4 sm:$0xff]  }
 0x11f   : > { %2944 = vmatprep.subr.bf16.mxu0 %v5297_v62  ;;  %3090 = vmatprep.subr.bf16.mxu1 %v5300_v63  ;;  %v5384_v62 = vld [vmem:[#allocation5 + $0x374] ss:$48 sps:$4 sm:$0xff]   ;;  %v5387_v63 = vld [vmem:[#allocation5 + $0x37c] ss:$48 sps:$4 sm:$0xff]  }
 0x122   : > { %2945 = vmatpush1.bf16.msra.mxu0 %v5295_v0  ;;  %3091 = vmatpush1.bf16.msra.mxu1 %v5298_v1  ;;  %v5382_v0 = vld [vmem:[#allocation5 + $0x370] ss:$48 sps:$4 sm:$0xff]   ;;  %v5385_v1 = vld [vmem:[#allocation5 + $0x378] ss:$48 sps:$4 sm:$0xff]  }
 0x123   : > { %2946 = vmatprep.subr.bf16.mxu0 %v5306_v2  ;;  %3092 = vmatprep.subr.bf16.mxu1 %v5309_v3  ;;  %v5390_v2 = vld [vmem:[#allocation5 + $0x3d4] ss:$48 sps:$4 sm:$0xff]   ;;  %v5393_v3 = vld [vmem:[#allocation5 + $0x3dc] ss:$48 sps:$4 sm:$0xff]  }
 0x126   : > { %2947 = vmatpush1.bf16.msra.mxu0 %v5304_v4  ;;  %3093 = vmatpush1.bf16.msra.mxu1 %v5307_v6  ;;  %v5388_v4 = vld [vmem:[#allocation5 + $0x3d0] ss:$48 sps:$4 sm:$0xff]   ;;  %v5391_v6 = vld [vmem:[#allocation5 + $0x3d8] ss:$48 sps:$4 sm:$0xff]  }
 0x127   : > { %2948 = vmatprep.subr.bf16.mxu0 %v5312_v7  ;;  %3094 = vmatprep.subr.bf16.mxu1 %v5315_v8  ;;  %v5399_v7 = vld [vmem:[#allocation5 + $0x43c] ss:$48 sps:$4 sm:$0xff]   ;;  %v5394_v8 = vld [vmem:[#allocation5 + $0x430] ss:$48 sps:$4 sm:$0xff]  }
 0x12a   : > { %2949 = vmatpush1.bf16.msra.mxu0 %v5310_v9  ;;  %3095 = vmatpush1.bf16.msra.mxu1 %v5313_v10  ;;  %v5397_v9 = vld [vmem:[#allocation5 + $0x438] ss:$48 sps:$4 sm:$0xff]   ;;  %v5402_v10 = vld [vmem:[#allocation5 + $0x494] ss:$48 sps:$4 sm:$0xff]  }
 0x12b   : > { %3137 = vmatprep.subr.bf16.mxu0 %v5321_v11  ;;  %3283 = vmatprep.subr.bf16.mxu1 %v5324_v12  ;;  %v5405_v11 = vld [vmem:[#allocation5 + $0x49c] ss:$48 sps:$4 sm:$0xff]   ;;  %v5400_v12 = vld [vmem:[#allocation5 + $0x490] ss:$48 sps:$4 sm:$0xff]  }
 0x12d   : > { %2951 = vmatmul.mubr.bf16.vlgmr.msra.gmra.mrb[0].mxu0 %v6348_v13  ;;  %3097 = vmatmul.mubr.bf16.vlgmr.msra.gmra.mrb[0].mxu1 %v6348_v13 }
 0x12e   : > { %3138 = vmatpush1.bf16.msra.mxu0 %v5319_v16  ;;  %3284 = vmatpush1.bf16.msra.mxu1 %v5322_v17  ;;  %v5403_v16 = vld [vmem:[#allocation5 + $0x498] ss:$48 sps:$4 sm:$0xff]   ;;  %v5408_v17 = vld [vmem:[#allocation5 + $0x4f4] ss:$48 sps:$4 sm:$0xff]  }
 0x12f   : > { %3139 = vmatprep.subr.bf16.mxu0 %v5327_v18  ;;  %3285 = vmatprep.subr.bf16.mxu1 %v5330_v19  ;;  %v5411_v18 = vld [vmem:[#allocation5 + $0x4fc] ss:$48 sps:$4 sm:$0xff]   ;;  %v5406_v19 = vld [vmem:[#allocation5 + $0x4f0] ss:$48 sps:$4 sm:$0xff]  }
 0x130   : > { %2960 = vmatprep.mubr.bf16.mxu0 %v6351_v20  ;;  %3106 = vmatprep.mubr.bf16.mxu1 %v6351_v20 }
 0x132   : > { %3140 = vmatpush1.bf16.msra.mxu0 %v5325_v21  ;;  %3286 = vmatpush1.bf16.msra.mxu1 %v5328_v22  ;;  %v5409_v21 = vld [vmem:[#allocation5 + $0x4f8] ss:$48 sps:$4 sm:$0xff]   ;;  %v5414_v22 = vld [vmem:[#allocation5 + $0x554] ss:$48 sps:$4 sm:$0xff]  }
 0x133   : > { %3141 = vmatprep.subr.bf16.mxu0 %v5336_v24  ;;  %3287 = vmatprep.subr.bf16.mxu1 %v5339_v26  ;;  %v5417_v24 = vld [vmem:[#allocation5 + $0x55c] ss:$48 sps:$4 sm:$0xff]   ;;  %v5412_v26 = vld [vmem:[#allocation5 + $0x550] ss:$48 sps:$4 sm:$0xff]  }
 0x135   : > { %2961 = vmatmul.mubr.bf16.gmra.mrb[4].mxu0 %v6358_v27  ;;  %3107 = vmatmul.mubr.bf16.gmra.mrb[4].mxu1 %v6358_v27 }
 0x136   : > { %3142 = vmatpush1.bf16.msra.mxu0 %v5334_v28  ;;  %3288 = vmatpush1.bf16.msra.mxu1 %v5337_v29  ;;  %v5415_v28 = vld [vmem:[#allocation5 + $0x558] ss:$48 sps:$4 sm:$0xff]   ;;  %v5420_v29 = vld [vmem:[#allocation5 + $0x5b4] ss:$48 sps:$4 sm:$0xff]  }
 0x137   : > { %3143 = vmatprep.subr.bf16.mxu0 %v5342_v30  ;;  %3289 = vmatprep.subr.bf16.mxu1 %v5345_v32  ;;  %v5423_v30 = vld [vmem:[#allocation5 + $0x5bc] ss:$48 sps:$4 sm:$0xff]   ;;  %v5418_v32 = vld [vmem:[#allocation5 + $0x5b0] ss:$48 sps:$4 sm:$0xff]  }
 0x138   : > { %2970 = vmatprep.mubr.bf16.mxu0 %v6361_v33  ;;  %3116 = vmatprep.mubr.bf16.mxu1 %v6361_v33 }
 0x13a   : > { %3144 = vmatpush1.bf16.msra.mxu0 %v5340_v34  ;;  %3290 = vmatpush1.bf16.msra.mxu1 %v5343_v36  ;;  %v5421_v34 = vld [vmem:[#allocation5 + $0x5b8] ss:$48 sps:$4 sm:$0xff]   ;;  %v5426_v36 = vld [vmem:[#allocation5 + $0x614] ss:$48 sps:$4 sm:$0xff]  }
 0x13b   : > { %3145 = vmatprep.subr.bf16.mxu0 %v5351_v37  ;;  %3291 = vmatprep.subr.bf16.mxu1 %v5354_v38  ;;  %v5429_v37 = vld [vmem:[#allocation5 + $0x61c] ss:$48 sps:$4 sm:$0xff]   ;;  %v5424_v38 = vld [vmem:[#allocation5 + $0x610] ss:$48 sps:$4 sm:$0xff]  }
 0x13d   : > { %2971 = vmatmul.mubr.bf16.gmra.mrb[8].mxu0 %v6368_v39  ;;  %3117 = vmatmul.mubr.bf16.gmra.mrb[8].mxu1 %v6368_v39 }
 0x13e   : > { %3146 = vmatpush1.bf16.msra.mxu0 %v5349_v41  ;;  %3292 = vmatpush1.bf16.msra.mxu1 %v5352_v42  ;;  %v5427_v41 = vld [vmem:[#allocation5 + $0x618] ss:$48 sps:$4 sm:$0xff]   ;;  %v5432_v42 = vld [vmem:[#allocation5 + $0x674] ss:$48 sps:$4 sm:$0xff]  }
 0x13f   : > { %3147 = vmatprep.subr.bf16.mxu0 %v5357_v43  ;;  %3293 = vmatprep.subr.bf16.mxu1 %v5360_v44  ;;  %v5435_v43 = vld [vmem:[#allocation5 + $0x67c] ss:$48 sps:$4 sm:$0xff]   ;;  %v5430_v44 = vld [vmem:[#allocation5 + $0x670] ss:$48 sps:$4 sm:$0xff]  }
 0x140   : > { %2980 = vmatprep.mubr.bf16.mxu0 %v6371_v45  ;;  %3126 = vmatprep.mubr.bf16.mxu1 %v6371_v45 }
 0x142   : > { %3148 = vmatpush1.bf16.msra.mxu0 %v5355_v46  ;;  %3294 = vmatpush1.bf16.msra.mxu1 %v5358_v48  ;;  %v5433_v46 = vld [vmem:[#allocation5 + $0x678] ss:$48 sps:$4 sm:$0xff]   ;;  %v5438_v48 = vld [vmem:[#allocation5 + $0x6d4] ss:$48 sps:$4 sm:$0xff]  }
 0x143   : > { %3149 = vmatprep.subr.bf16.mxu0 %v5366_v49  ;;  %3295 = vmatprep.subr.bf16.mxu1 %v5369_v50  ;;  %v5441_v49 = vld [vmem:[#allocation5 + $0x6dc] ss:$48 sps:$4 sm:$0xff]   ;;  %v5436_v50 = vld [vmem:[#allocation5 + $0x6d0] ss:$48 sps:$4 sm:$0xff]  }
 0x145   : > { %2981 = vmatmul.mubr.bf16.gmra.mrb[12].mxu0 %v6378_v51  ;;  %3127 = vmatmul.mubr.bf16.gmra.mrb[12].mxu1 %v6378_v51 }
 0x146   : > { %3150 = vmatpush1.bf16.msra.mxu0 %v5364_v52  ;;  %3296 = vmatpush1.bf16.msra.mxu1 %v5367_v53  ;;  %v5439_v52 = vld [vmem:[#allocation5 + $0x6d8] ss:$48 sps:$4 sm:$0xff]   ;;  %v5444_v53 = vld [vmem:[#allocation5 + $0x734] ss:$48 sps:$4 sm:$0xff]  }
 0x147   : > { %3151 = vmatprep.subr.bf16.mxu0 %v5372_v54  ;;  %3297 = vmatprep.subr.bf16.mxu1 %v5375_v55  ;;  %v5442_v54 = vld [vmem:[#allocation5 + $0x730] ss:$48 sps:$4 sm:$0xff]   ;;  %v5445_v55 = vld [vmem:[#allocation5 + $0x738] ss:$48 sps:$4 sm:$0xff]  }
 0x148   : > { %3169 = vmatprep.mubr.bf16.mxu0 %v6303_v47  ;;  %3315 = vmatprep.mubr.bf16.mxu1 %v6303_v47  ;;  %v5396_v47 = vld [vmem:[#allocation5 + $0x434] ss:$48 sps:$4 sm:$0xff]  }
 0x14a   : > { %3152 = vmatpush1.bf16.msra.mxu0 %v5370_v56  ;;  %3298 = vmatpush1.bf16.msra.mxu1 %v5373_v57  ;;  %v5450_v56 = vld [vmem:[#allocation5 + $0x794] ss:$48 sps:$4 sm:$0xff]   ;;  %v5448_v57 = vld [vmem:[#allocation5 + $0x790] ss:$48 sps:$4 sm:$0xff]  }
 0x14b   : > { %3153 = vmatprep.subr.bf16.mxu0 %v5378_v58  ;;  %3299 = vmatprep.subr.bf16.mxu1 %v5381_v59  ;;  %v5451_v58 = vld [vmem:[#allocation5 + $0x798] ss:$48 sps:$4 sm:$0xff]   ;;  %v5456_v59 = vld [vmem:[#allocation5 + $0x7f4] ss:$48 sps:$4 sm:$0xff]  }
 0x14e   : > { %3154 = vmatpush1.bf16.msra.mxu0 %v5376_v60  ;;  %3300 = vmatpush1.bf16.msra.mxu1 %v5379_v61  ;;  %v5459_v60 = vld [vmem:[#allocation5 + $0x7fc] ss:$48 sps:$4 sm:$0xff]   ;;  %v5454_v61 = vld [vmem:[#allocation5 + $0x7f0] ss:$48 sps:$4 sm:$0xff]  }
 0x14f   : > { %3155 = vmatprep.subr.bf16.mxu0 %v5384_v62  ;;  %3301 = vmatprep.subr.bf16.mxu1 %v5387_v63  ;;  %v5462_v62 = vld [vmem:[#allocation5 + $0x854] ss:$48 sps:$4 sm:$0xff]   ;;  %v5460_v63 = vld [vmem:[#allocation5 + $0x850] ss:$48 sps:$4 sm:$0xff]  }
 0x152   : > { %3156 = vmatpush1.bf16.msra.mxu0 %v5382_v0  ;;  %3302 = vmatpush1.bf16.msra.mxu1 %v5385_v1  ;;  %v5463_v0 = vld [vmem:[#allocation5 + $0x858] ss:$48 sps:$4 sm:$0xff]   ;;  %v5468_v1 = vld [vmem:[#allocation5 + $0x8b4] ss:$48 sps:$4 sm:$0xff]  }
 0x153   : > { %3157 = vmatprep.subr.bf16.mxu0 %v5390_v2  ;;  %3303 = vmatprep.subr.bf16.mxu1 %v5393_v3  ;;  %v5471_v2 = vld [vmem:[#allocation5 + $0x8bc] ss:$48 sps:$4 sm:$0xff]   ;;  %v5466_v3 = vld [vmem:[#allocation5 + $0x8b0] ss:$48 sps:$4 sm:$0xff]  }
 0x156   : > { %3158 = vmatpush1.bf16.msra.mxu0 %v5388_v4  ;;  %3304 = vmatpush1.bf16.msra.mxu1 %v5391_v6  ;;  %v5474_v4 = vld [vmem:[#allocation5 + $0x914] ss:$48 sps:$4 sm:$0xff]   ;;  %v5472_v6 = vld [vmem:[#allocation5 + $0x910] ss:$48 sps:$4 sm:$0xff]  }
 0x157   : > { %3159 = vmatprep.subr.bf16.mxu0 %v5396_v47  ;;  %3305 = vmatprep.subr.bf16.mxu1 %v5399_v7  ;;  %v5475_v47 = vld [vmem:[#allocation5 + $0x918] ss:$48 sps:$4 sm:$0xff]   ;;  %v5480_v7 = vld [vmem:[#allocation5 + $0x974] ss:$48 sps:$4 sm:$0xff]  }
 0x15a   : > { %3160 = vmatpush1.bf16.msra.mxu0 %v5394_v8  ;;  %3306 = vmatpush1.bf16.msra.mxu1 %v5397_v9  ;;  %v5483_v8 = vld [vmem:[#allocation5 + $0x97c] ss:$48 sps:$4 sm:$0xff]   ;;  %v5478_v9 = vld [vmem:[#allocation5 + $0x970] ss:$48 sps:$4 sm:$0xff]  }
 0x15b   : > { %3161 = vmatprep.subr.bf16.mxu0 %v5402_v10  ;;  %3307 = vmatprep.subr.bf16.mxu1 %v5405_v11  ;;  %v5486_v10 = vld [vmem:[#allocation5 + $0x9d4] ss:$48 sps:$4 sm:$0xff]   ;;  %v5489_v11 = vld [vmem:[#allocation5 + $0x9dc] ss:$48 sps:$4 sm:$0xff]  }
 0x15e   : > { %3162 = vmatpush1.bf16.msra.mxu0 %v5400_v12  ;;  %3308 = vmatpush1.bf16.msra.mxu1 %v5403_v16  ;;  %v5484_v12 = vld [vmem:[#allocation5 + $0x9d0] ss:$48 sps:$4 sm:$0xff]   ;;  %v5487_v16 = vld [vmem:[#allocation5 + $0x9d8] ss:$48 sps:$4 sm:$0xff]  }
 0x15f   : > { %3163 = vmatprep.subr.bf16.mxu0 %v5408_v17  ;;  %3309 = vmatprep.subr.bf16.mxu1 %v5411_v18  ;;  %v5495_v17 = vld [vmem:[#allocation5 + $0xa3c] ss:$48 sps:$4 sm:$0xff]   ;;  %v5490_v18 = vld [vmem:[#allocation5 + $0xa30] ss:$48 sps:$4 sm:$0xff]  }
 0x162   : > { %3164 = vmatpush1.bf16.msra.mxu0 %v5406_v19  ;;  %3310 = vmatpush1.bf16.msra.mxu1 %v5409_v21  ;;  %v5493_v19 = vld [vmem:[#allocation5 + $0xa38] ss:$48 sps:$4 sm:$0xff]   ;;  %v5498_v21 = vld [vmem:[#allocation5 + $0xa94] ss:$48 sps:$4 sm:$0xff]  }
 0x163   : > { %3165 = vmatprep.subr.bf16.mxu0 %v5414_v22  ;;  %3311 = vmatprep.subr.bf16.mxu1 %v5417_v24  ;;  %v5501_v22 = vld [vmem:[#allocation5 + $0xa9c] ss:$48 sps:$4 sm:$0xff]   ;;  %v5496_v24 = vld [vmem:[#allocation5 + $0xa90] ss:$48 sps:$4 sm:$0xff]  }
 0x166   : > { %3166 = vmatpush1.bf16.msra.mxu0 %v5412_v26  ;;  %3312 = vmatpush1.bf16.msra.mxu1 %v5415_v28  ;;  %v5499_v26 = vld [vmem:[#allocation5 + $0xa98] ss:$48 sps:$4 sm:$0xff]   ;;  %v5504_v28 = vld [vmem:[#allocation5 + $0xaf4] ss:$48 sps:$4 sm:$0xff]  }
 0x167   : > { %3167 = vmatprep.subr.bf16.mxu0 %v5420_v29  ;;  %3313 = vmatprep.subr.bf16.mxu1 %v5423_v30  ;;  %v5507_v29 = vld [vmem:[#allocation5 + $0xafc] ss:$48 sps:$4 sm:$0xff]   ;;  %v5502_v30 = vld [vmem:[#allocation5 + $0xaf0] ss:$48 sps:$4 sm:$0xff]  }
 0x16a   : > { %3168 = vmatpush1.bf16.msra.mxu0 %v5418_v32  ;;  %3314 = vmatpush1.bf16.msra.mxu1 %v5421_v34  ;;  %v5505_v32 = vld [vmem:[#allocation5 + $0xaf8] ss:$48 sps:$4 sm:$0xff]   ;;  %v5510_v34 = vld [vmem:[#allocation5 + $0xb54] ss:$48 sps:$4 sm:$0xff]  }
 0x16b   : > { %3210 = vmatprep.subr.bf16.mxu0 %v5426_v36  ;;  %3356 = vmatprep.subr.bf16.mxu1 %v5429_v37  ;;  %v5513_v36 = vld [vmem:[#allocation5 + $0xb5c] ss:$48 sps:$4 sm:$0xff]   ;;  %v5508_v37 = vld [vmem:[#allocation5 + $0xb50] ss:$48 sps:$4 sm:$0xff]  }
 0x16d   : > { %3170 = vmatmul.mubr.bf16.vlgmr.msra.gmra.mrb[16].mxu0 %v6308_v5  ;;  %3316 = vmatmul.mubr.bf16.vlgmr.msra.gmra.mrb[16].mxu1 %v6308_v5  ;;  %v5447_v5 = vld [vmem:[#allocation5 + $0x73c] ss:$48 sps:$4 sm:$0xff]  }
 0x16e   : > { %3211 = vmatpush1.bf16.msra.mxu0 %v5424_v38  ;;  %3357 = vmatpush1.bf16.msra.mxu1 %v5427_v41  ;;  %v5511_v38 = vld [vmem:[#allocation5 + $0xb58] ss:$48 sps:$4 sm:$0xff]   ;;  %v5516_v41 = vld [vmem:[#allocation5 + $0xbb4] ss:$48 sps:$4 sm:$0xff]  }
 0x16f   : > { %3212 = vmatprep.subr.bf16.mxu0 %v5432_v42  ;;  %3358 = vmatprep.subr.bf16.mxu1 %v5435_v43  ;;  %v5519_v42 = vld [vmem:[#allocation5 + $0xbbc] ss:$48 sps:$4 sm:$0xff]   ;;  %v5514_v43 = vld [vmem:[#allocation5 + $0xbb0] ss:$48 sps:$4 sm:$0xff]  }
 0x170   : > { %3179 = vmatprep.mubr.bf16.mxu0 %v6313_v14  ;;  %3325 = vmatprep.mubr.bf16.mxu1 %v6313_v14  ;;  %v5453_v14 = vld [vmem:[#allocation5 + $0x79c] ss:$48 sps:$4 sm:$0xff]  }
 0x172   : > { %3213 = vmatpush1.bf16.msra.mxu0 %v5430_v44  ;;  %3359 = vmatpush1.bf16.msra.mxu1 %v5433_v46  ;;  %v5517_v44 = vld [vmem:[#allocation5 + $0xbb8] ss:$48 sps:$4 sm:$0xff]   ;;  %v5522_v46 = vld [vmem:[#allocation5 + $0x24] ss:$48 sps:$4 sm:$0xff]  }
 0x173   : > { %3214 = vmatprep.subr.bf16.mxu0 %v5438_v48  ;;  %3360 = vmatprep.subr.bf16.mxu1 %v5441_v49  ;;  %v5525_v48 = vld [vmem:[#allocation5 + $0x2c] ss:$48 sps:$4 sm:$0xff]   ;;  %v5520_v49 = vld [vmem:[#allocation5 + $0x20] ss:$48 sps:$4 sm:$0xff]  }
 0x175   : > { %3180 = vmatmul.mubr.bf16.gmra.mrb[20].mxu0 %v6316_v15  ;;  %3326 = vmatmul.mubr.bf16.gmra.mrb[20].mxu1 %v6316_v15  ;;  %v5457_v15 = vld [vmem:[#allocation5 + $0x7f8] ss:$48 sps:$4 sm:$0xff]  }
 0x176   : > { %3215 = vmatpush1.bf16.msra.mxu0 %v5436_v50  ;;  %3361 = vmatpush1.bf16.msra.mxu1 %v5439_v52  ;;  %v5523_v50 = vld [vmem:[#allocation5 + $0x28] ss:$48 sps:$4 sm:$0xff]   ;;  %v5528_v52 = vld [vmem:[#allocation5 + $0x84] ss:$48 sps:$4 sm:$0xff]  }
 0x177   : > { %3216 = vmatprep.subr.bf16.mxu0 %v5444_v53  ;;  %3362 = vmatprep.subr.bf16.mxu1 %v5447_v5  ;;  %v5531_v53 = vld [vmem:[#allocation5 + $0x8c] ss:$48 sps:$4 sm:$0xff]   ;;  %v5526_v5 = vld [vmem:[#allocation5 + $0x80] ss:$48 sps:$4 sm:$0xff]  }
 0x178   : > { %3189 = vmatprep.mubr.bf16.mxu0 %v6323_v23  ;;  %3335 = vmatprep.mubr.bf16.mxu1 %v6323_v23  ;;  %v5465_v23 = vld [vmem:[#allocation5 + $0x85c] ss:$48 sps:$4 sm:$0xff]  }
 0x17a   : > { %3217 = vmatpush1.bf16.msra.mxu0 %v5442_v54  ;;  %3363 = vmatpush1.bf16.msra.mxu1 %v5445_v55  ;;  %v5529_v54 = vld [vmem:[#allocation5 + $0x88] ss:$48 sps:$4 sm:$0xff]   ;;  %v5534_v55 = vld [vmem:[#allocation5 + $0xe4] ss:$48 sps:$4 sm:$0xff]  }
 0x17b   : > { %3218 = vmatprep.subr.bf16.mxu0 %v5450_v56  ;;  %3364 = vmatprep.subr.bf16.mxu1 %v5453_v14  ;;  %v5537_v56 = vld [vmem:[#allocation5 + $0xec] ss:$48 sps:$4 sm:$0xff]   ;;  %v5532_v14 = vld [vmem:[#allocation5 + $0xe0] ss:$48 sps:$4 sm:$0xff]  }
 0x17d   : > { %3190 = vmatmul.mubr.bf16.gmra.mrb[24].mxu0 %v6326_v25  ;;  %3336 = vmatmul.mubr.bf16.gmra.mrb[24].mxu1 %v6326_v25  ;;  %v5469_v25 = vld [vmem:[#allocation5 + $0x8b8] ss:$48 sps:$4 sm:$0xff]  }
 0x17e   : > { %3219 = vmatpush1.bf16.msra.mxu0 %v5448_v57  ;;  %3365 = vmatpush1.bf16.msra.mxu1 %v5451_v58  ;;  %v5535_v57 = vld [vmem:[#allocation5 + $0xe8] ss:$48 sps:$4 sm:$0xff]   ;;  %v5540_v58 = vld [vmem:[#allocation5 + $0x144] ss:$48 sps:$4 sm:$0xff]  }
 0x17f   : > { %3220 = vmatprep.subr.bf16.mxu0 %v5456_v59  ;;  %3366 = vmatprep.subr.bf16.mxu1 %v5459_v60  ;;  %v5538_v59 = vld [vmem:[#allocation5 + $0x140] ss:$48 sps:$4 sm:$0xff]   ;;  %v5541_v60 = vld [vmem:[#allocation5 + $0x148] ss:$48 sps:$4 sm:$0xff]  }
 0x180   : > { %3199 = vmatprep.mubr.bf16.mxu0 %v6333_v31  ;;  %3345 = vmatprep.mubr.bf16.mxu1 %v6333_v31  ;;  %v5477_v31 = vld [vmem:[#allocation5 + $0x91c] ss:$48 sps:$4 sm:$0xff]  }
 0x182   : > { %3221 = vmatpush1.bf16.msra.mxu0 %v5454_v61  ;;  %3367 = vmatpush1.bf16.msra.mxu1 %v5457_v15  ;;  %v5546_v61 = vld [vmem:[#allocation5 + $0x1a4] ss:$48 sps:$4 sm:$0xff]   ;;  %v5544_v15 = vld [vmem:[#allocation5 + $0x1a0] ss:$48 sps:$4 sm:$0xff]  }
 0x183   : > { %3222 = vmatprep.subr.bf16.mxu0 %v5462_v62  ;;  %3368 = vmatprep.subr.bf16.mxu1 %v5465_v23  ;;  %v5547_v62 = vld [vmem:[#allocation5 + $0x1a8] ss:$48 sps:$4 sm:$0xff]   ;;  %v5552_v23 = vld [vmem:[#allocation5 + $0x204] ss:$48 sps:$4 sm:$0xff]  }
 0x185   : > { %3200 = vmatmul.mubr.bf16.gmra.mrb[28].mxu0 %v6338_v35  ;;  %3346 = vmatmul.mubr.bf16.gmra.mrb[28].mxu1 %v6338_v35  ;;  %v5481_v35 = vld [vmem:[#allocation5 + $0x978] ss:$48 sps:$4 sm:$0xff]  }
 0x186   : > { %3223 = vmatpush1.bf16.msra.mxu0 %v5460_v63  ;;  %3369 = vmatpush1.bf16.msra.mxu1 %v5463_v0  ;;  %v5550_v63 = vld [vmem:[#allocation5 + $0x200] ss:$48 sps:$4 sm:$0xff]   ;;  %v5553_v0 = vld [vmem:[#allocation5 + $0x208] ss:$48 sps:$4 sm:$0xff]  }
 0x187   : > { %3224 = vmatprep.subr.bf16.mxu0 %v5468_v1  ;;  %3370 = vmatprep.subr.bf16.mxu1 %v5471_v2  ;;  %v5558_v1 = vld [vmem:[#allocation5 + $0x264] ss:$48 sps:$4 sm:$0xff]   ;;  %v5556_v2 = vld [vmem:[#allocation5 + $0x260] ss:$48 sps:$4 sm:$0xff]  }
 0x188   : > { %3242 = vmatprep.mubr.bf16.mxu0 %v6343_v40  ;;  %3388 = vmatprep.mubr.bf16.mxu1 %v6343_v40  ;;  %v5492_v40 = vld [vmem:[#allocation5 + $0xa34] ss:$48 sps:$4 sm:$0xff]  }
 0x18a   : > { %3225 = vmatpush1.bf16.msra.mxu0 %v5466_v3  ;;  %3371 = vmatpush1.bf16.msra.mxu1 %v5469_v25  ;;  %v5559_v3 = vld [vmem:[#allocation5 + $0x268] ss:$48 sps:$4 sm:$0xff]   ;;  %v5567_v25 = vld [vmem:[#allocation5 + $0x2cc] ss:$48 sps:$4 sm:$0xff]  }
 0x18b   : > { %3226 = vmatprep.subr.bf16.mxu0 %v5474_v4  ;;  %3372 = vmatprep.subr.bf16.mxu1 %v5477_v31  ;;  %v5562_v4 = vld [vmem:[#allocation5 + $0x2c0] ss:$48 sps:$4 sm:$0xff]   ;;  %v5565_v31 = vld [vmem:[#allocation5 + $0x2c8] ss:$48 sps:$4 sm:$0xff]  }
 0x18e   : > { %3227 = vmatpush1.bf16.msra.mxu0 %v5472_v6  ;;  %3373 = vmatpush1.bf16.msra.mxu1 %v5475_v47  ;;  %v5573_v6 = vld [vmem:[#allocation5 + $0x32c] ss:$48 sps:$4 sm:$0xff]   ;;  %v5712_v47 = vld [vmem:[%s6288_s21 + $0x4] ss:$16 sps:$4 sm:$0xff]  }
 0x18f   : > { %3228 = vmatprep.subr.bf16.mxu0 %v5480_v7  ;;  %3374 = vmatprep.subr.bf16.mxu1 %v5483_v8  ;;  %v5568_v7 = vld [vmem:[#allocation5 + $0x320] ss:$48 sps:$4 sm:$0xff]   ;;  %v5571_v8 = vld [vmem:[#allocation5 + $0x328] ss:$48 sps:$4 sm:$0xff]  }
 0x192   : > { %3229 = vmatpush1.bf16.msra.mxu0 %v5478_v9  ;;  %3375 = vmatpush1.bf16.msra.mxu1 %v5481_v35  ;;  %v5576_v9 = vld [vmem:[#allocation5 + $0x384] ss:$48 sps:$4 sm:$0xff]   ;;  %v5579_v35 = vld [vmem:[#allocation5 + $0x38c] ss:$48 sps:$4 sm:$0xff]  }
 0x193   : > { %3230 = vmatprep.subr.bf16.mxu0 %v5486_v10  ;;  %3376 = vmatprep.subr.bf16.mxu1 %v5489_v11  ;;  %v5577_v10 = vld [vmem:[#allocation5 + $0x388] ss:$48 sps:$4 sm:$0xff]   ;;  %v5582_v11 = vld [vmem:[#allocation5 + $0x3e4] ss:$48 sps:$4 sm:$0xff]  }
 0x196   : > { %3231 = vmatpush1.bf16.msra.mxu0 %v5484_v12  ;;  %3377 = vmatpush1.bf16.msra.mxu1 %v5487_v16  ;;  %v5585_v12 = vld [vmem:[#allocation5 + $0x3ec] ss:$48 sps:$4 sm:$0xff]   ;;  %v5580_v16 = vld [vmem:[#allocation5 + $0x3e0] ss:$48 sps:$4 sm:$0xff]  }
 0x197   : > { %3232 = vmatprep.subr.bf16.mxu0 %v5492_v40  ;;  %3378 = vmatprep.subr.bf16.mxu1 %v5495_v17  ;;  %v5583_v40 = vld [vmem:[#allocation5 + $0x3e8] ss:$48 sps:$4 sm:$0xff]   ;;  %v5588_v17 = vld [vmem:[#allocation5 + $0x444] ss:$48 sps:$4 sm:$0xff]  }
 0x19a   : > { %3233 = vmatpush1.bf16.msra.mxu0 %v5490_v18  ;;  %3379 = vmatpush1.bf16.msra.mxu1 %v5493_v19  ;;  %v5591_v18 = vld [vmem:[#allocation5 + $0x44c] ss:$48 sps:$4 sm:$0xff]   ;;  %v5586_v19 = vld [vmem:[#allocation5 + $0x440] ss:$48 sps:$4 sm:$0xff]  }
 0x19b   : > { %3234 = vmatprep.subr.bf16.mxu0 %v5498_v21  ;;  %3380 = vmatprep.subr.bf16.mxu1 %v5501_v22  ;;  %v5589_v21 = vld [vmem:[#allocation5 + $0x448] ss:$48 sps:$4 sm:$0xff]   ;;  %v5594_v22 = vld [vmem:[#allocation5 + $0x4a4] ss:$48 sps:$4 sm:$0xff]  }
 0x19e   : > { %3235 = vmatpush1.bf16.msra.mxu0 %v5496_v24  ;;  %3381 = vmatpush1.bf16.msra.mxu1 %v5499_v26  ;;  %v5597_v24 = vld [vmem:[#allocation5 + $0x4ac] ss:$48 sps:$4 sm:$0xff]   ;;  %v5592_v26 = vld [vmem:[#allocation5 + $0x4a0] ss:$48 sps:$4 sm:$0xff]  }
 0x19f   : > { %3236 = vmatprep.subr.bf16.mxu0 %v5504_v28  ;;  %3382 = vmatprep.subr.bf16.mxu1 %v5507_v29  ;;  %v5595_v28 = vld [vmem:[#allocation5 + $0x4a8] ss:$48 sps:$4 sm:$0xff]   ;;  %v5600_v29 = vld [vmem:[#allocation5 + $0x504] ss:$48 sps:$4 sm:$0xff]  }
 0x1a2   : > { %3237 = vmatpush1.bf16.msra.mxu0 %v5502_v30  ;;  %3383 = vmatpush1.bf16.msra.mxu1 %v5505_v32  ;;  %v5603_v30 = vld [vmem:[#allocation5 + $0x50c] ss:$48 sps:$4 sm:$0xff]   ;;  %v5598_v32 = vld [vmem:[#allocation5 + $0x500] ss:$48 sps:$4 sm:$0xff]  }
 0x1a3   : > { %3238 = vmatprep.subr.bf16.mxu0 %v5510_v34  ;;  %3384 = vmatprep.subr.bf16.mxu1 %v5513_v36  ;;  %v5601_v34 = vld [vmem:[#allocation5 + $0x508] ss:$48 sps:$4 sm:$0xff]   ;;  %v5606_v36 = vld [vmem:[#allocation5 + $0x564] ss:$48 sps:$4 sm:$0xff]  }
 0x1a6   : > { %3239 = vmatpush1.bf16.msra.mxu0 %v5508_v37  ;;  %3385 = vmatpush1.bf16.msra.mxu1 %v5511_v38  ;;  %v5609_v37 = vld [vmem:[#allocation5 + $0x56c] ss:$48 sps:$4 sm:$0xff]   ;;  %v5604_v38 = vld [vmem:[#allocation5 + $0x560] ss:$48 sps:$4 sm:$0xff]  }
 0x1a7   : > { %3240 = vmatprep.subr.bf16.mxu0 %v5516_v41  ;;  %3386 = vmatprep.subr.bf16.mxu1 %v5519_v42  ;;  %v5607_v41 = vld [vmem:[#allocation5 + $0x568] ss:$48 sps:$4 sm:$0xff]   ;;  %v5612_v42 = vld [vmem:[#allocation5 + $0x5c4] ss:$48 sps:$4 sm:$0xff]  }
 0x1aa   : > { %3241 = vmatpush1.bf16.msra.mxu0 %v5514_v43  ;;  %3387 = vmatpush1.bf16.msra.mxu1 %v5517_v44  ;;  %v5615_v43 = vld [vmem:[#allocation5 + $0x5cc] ss:$48 sps:$4 sm:$0xff]   ;;  %v5610_v44 = vld [vmem:[#allocation5 + $0x5c0] ss:$48 sps:$4 sm:$0xff]  }
 0x1ab   : > { %3429 = vmatprep.subr.bf16.mxu0 %v5522_v46  ;;  %3575 = vmatprep.subr.bf16.mxu1 %v5525_v48  ;;  %v5613_v46 = vld [vmem:[#allocation5 + $0x5c8] ss:$48 sps:$4 sm:$0xff]   ;;  %v5618_v48 = vld [vmem:[#allocation5 + $0x624] ss:$48 sps:$4 sm:$0xff]  }
 0x1ad   : > { %3243 = vmatmul.mubr.bf16.vlgmr.msra.gmra.mrb[16].mxu0 %v6348_v13  ;;  %3389 = vmatmul.mubr.bf16.vlgmr.msra.gmra.mrb[16].mxu1 %v6348_v13  ;;  %v5543_v13 = vld [vmem:[#allocation5 + $0x14c] ss:$48 sps:$4 sm:$0xff]  }
 0x1ae   : > { %3430 = vmatpush1.bf16.msra.mxu0 %v5520_v49  ;;  %3576 = vmatpush1.bf16.msra.mxu1 %v5523_v50  ;;  %v5621_v49 = vld [vmem:[#allocation5 + $0x62c] ss:$48 sps:$4 sm:$0xff]   ;;  %v5616_v50 = vld [vmem:[#allocation5 + $0x620] ss:$48 sps:$4 sm:$0xff]  }
 0x1af   : > { %3431 = vmatprep.subr.bf16.mxu0 %v5528_v52  ;;  %3577 = vmatprep.subr.bf16.mxu1 %v5531_v53  ;;  %v5619_v52 = vld [vmem:[#allocation5 + $0x628] ss:$48 sps:$4 sm:$0xff]   ;;  %v5624_v53 = vld [vmem:[#allocation5 + $0x684] ss:$48 sps:$4 sm:$0xff]  }
 0x1b0   : > { %3252 = vmatprep.mubr.bf16.mxu0 %v6351_v20  ;;  %3398 = vmatprep.mubr.bf16.mxu1 %v6351_v20  ;;  %v5549_v20 = vld [vmem:[#allocation5 + $0x1ac] ss:$48 sps:$4 sm:$0xff]  }
 0x1b2   : > { %3432 = vmatpush1.bf16.msra.mxu0 %v5526_v5  ;;  %3578 = vmatpush1.bf16.msra.mxu1 %v5529_v54  ;;  %v5627_v5 = vld [vmem:[#allocation5 + $0x68c] ss:$48 sps:$4 sm:$0xff]   ;;  %v5713_v54 = vld [vmem:[%s6288_s21] ss:$16 sps:$4 sm:$0xff]  }
 0x1b3   : > { %3433 = vmatprep.subr.bf16.mxu0 %v5534_v55  ;;  %3579 = vmatprep.subr.bf16.mxu1 %v5537_v56  ;;  %v5622_v55 = vld [vmem:[#allocation5 + $0x680] ss:$48 sps:$4 sm:$0xff]   ;;  %v5625_v56 = vld [vmem:[#allocation5 + $0x688] ss:$48 sps:$4 sm:$0xff]  }
 0x1b5   : > { %3253 = vmatmul.mubr.bf16.gmra.mrb[20].mxu0 %v6358_v27  ;;  %3399 = vmatmul.mubr.bf16.gmra.mrb[20].mxu1 %v6358_v27  ;;  %v5555_v27 = vld [vmem:[#allocation5 + $0x20c] ss:$48 sps:$4 sm:$0xff]  }
 0x1b6   : > { %3434 = vmatpush1.bf16.msra.mxu0 %v5532_v14  ;;  %3580 = vmatpush1.bf16.msra.mxu1 %v5535_v57  ;;  %v5630_v14 = vld [vmem:[#allocation5 + $0x6e4] ss:$48 sps:$4 sm:$0xff]   ;;  %v5633_v57 = vld [vmem:[#allocation5 + $0x6ec] ss:$48 sps:$4 sm:$0xff]  }
 0x1b7   : > { %3435 = vmatprep.subr.bf16.mxu0 %v5540_v58  ;;  %3581 = vmatprep.subr.bf16.mxu1 %v5543_v13  ;;  %v5714_v58 = vld [vmem:[%s6288_s21 + $0x24] ss:$16 sps:$4 sm:$0xff]   ;;  %v5628_v13 = vld [vmem:[#allocation5 + $0x6e0] ss:$48 sps:$4 sm:$0xff]  }
 0x1b8   : > { %3262 = vmatprep.mubr.bf16.mxu0 %v6361_v33  ;;  %3408 = vmatprep.mubr.bf16.mxu1 %v6361_v33  ;;  %v5561_v33 = vld [vmem:[#allocation5 + $0x26c] ss:$48 sps:$4 sm:$0xff]  }
 0x1ba   : > { %3436 = vmatpush1.bf16.msra.mxu0 %v5538_v59  ;;  %3582 = vmatpush1.bf16.msra.mxu1 %v5541_v60  ;;  %v5631_v59 = vld [vmem:[#allocation5 + $0x6e8] ss:$48 sps:$4 sm:$0xff]   ;;  %v5636_v60 = vld [vmem:[#allocation5 + $0x744] ss:$48 sps:$4 sm:$0xff]  }
 0x1bb   : > { %3437 = vmatprep.subr.bf16.mxu0 %v5546_v61  ;;  %3583 = vmatprep.subr.bf16.mxu1 %v5549_v20  ;;  %v5639_v61 = vld [vmem:[#allocation5 + $0x74c] ss:$48 sps:$4 sm:$0xff]   ;;  %v5715_v20 = vld [vmem:[%s6288_s21 + $0x20] ss:$16 sps:$4 sm:$0xff]  }
 0x1bd   : > { %3263 = vmatmul.mubr.bf16.gmra.mrb[24].mxu0 %v6368_v39  ;;  %3409 = vmatmul.mubr.bf16.gmra.mrb[24].mxu1 %v6368_v39  ;;  %v5564_v39 = vld [vmem:[#allocation5 + $0x2c4] ss:$48 sps:$4 sm:$0xff]  }
 0x1be   : > { %3438 = vmatpush1.bf16.msra.mxu0 %v5544_v15  ;;  %3584 = vmatpush1.bf16.msra.mxu1 %v5547_v62  ;;  %v5634_v15 = vld [vmem:[#allocation5 + $0x740] ss:$48 sps:$4 sm:$0xff]   ;;  %v5637_v62 = vld [vmem:[#allocation5 + $0x748] ss:$48 sps:$4 sm:$0xff]  }
 0x1bf   : > { %3439 = vmatprep.subr.bf16.mxu0 %v5552_v23  ;;  %3585 = vmatprep.subr.bf16.mxu1 %v5555_v27  ;;  %v5642_v23 = vld [vmem:[#allocation5 + $0x7a4] ss:$48 sps:$4 sm:$0xff]   ;;  %v5645_v27 = vld [vmem:[#allocation5 + $0x7ac] ss:$48 sps:$4 sm:$0xff]  }
 0x1c0   : > { %3272 = vmatprep.mubr.bf16.mxu0 %v6371_v45  ;;  %3418 = vmatprep.mubr.bf16.mxu1 %v6371_v45  ;;  %v5570_v45 = vld [vmem:[#allocation5 + $0x324] ss:$48 sps:$4 sm:$0xff]  }
 0x1c2   : > { %3440 = vmatpush1.bf16.msra.mxu0 %v5550_v63  ;;  %3586 = vmatpush1.bf16.msra.mxu1 %v5553_v0  ;;  %v5716_v63 = vld [vmem:[%s6288_s21 + $0x44] ss:$16 sps:$4 sm:$0xff]   ;;  %v5640_v0 = vld [vmem:[#allocation5 + $0x7a0] ss:$48 sps:$4 sm:$0xff]  }
 0x1c3   : > { %3441 = vmatprep.subr.bf16.mxu0 %v5558_v1  ;;  %3587 = vmatprep.subr.bf16.mxu1 %v5561_v33  ;;  %v5643_v1 = vld [vmem:[#allocation5 + $0x7a8] ss:$48 sps:$4 sm:$0xff]   ;;  %v5648_v33 = vld [vmem:[#allocation5 + $0x804] ss:$48 sps:$4 sm:$0xff]  }
 0x1c5   : > { %3273 = vmatmul.mubr.bf16.gmra.mrb[28].mxu0 %v6378_v51  ;;  %3419 = vmatmul.mubr.bf16.gmra.mrb[28].mxu1 %v6378_v51  ;;  %v5574_v51 = vld [vmem:[#allocation5 + $0x380] ss:$48 sps:$4 sm:$0xff]  }
 0x1c6   : > { %3442 = vmatpush1.bf16.msra.mxu0 %v5556_v2  ;;  %3588 = vmatpush1.bf16.msra.mxu1 %v5559_v3  ;;  %v5651_v2 = vld [vmem:[#allocation5 + $0x80c] ss:$48 sps:$4 sm:$0xff]   ;;  %v5717_v3 = vld [vmem:[%s6288_s21 + $0x40] ss:$16 sps:$4 sm:$0xff]  }
 0x1c7   : > { %3443 = vmatprep.subr.bf16.mxu0 %v5564_v39  ;;  %3589 = vmatprep.subr.bf16.mxu1 %v5567_v25  ;;  %v5646_v39 = vld [vmem:[#allocation5 + $0x800] ss:$48 sps:$4 sm:$0xff]   ;;  %v5649_v25 = vld [vmem:[#allocation5 + $0x808] ss:$48 sps:$4 sm:$0xff]  }
 0x1c8   : > { %3461 = vmatprep.mubr.bf16.mxu0 %v5712_v47  ;;  %3607 = vmatprep.mubr.bf16.mxu1 %v5712_v47  ;;  %v5718_v47 = vld [vmem:[%s6288_s21 + $0x64] ss:$16 sps:$4 sm:$0xff]  }
 0x1ca   : > { %3444 = vmatpush1.bf16.msra.mxu0 %v5562_v4  ;;  %3590 = vmatpush1.bf16.msra.mxu1 %v5565_v31  ;;  %v5654_v4 = vld [vmem:[#allocation5 + $0x864] ss:$48 sps:$4 sm:$0xff]  }
 0x1cb   : > { %3445 = vmatprep.subr.bf16.mxu0 %v5570_v45  ;;  %3591 = vmatprep.subr.bf16.mxu1 %v5573_v6  ;;  %v5657_v6 = vld [vmem:[#allocation5 + $0x86c] ss:$48 sps:$4 sm:$0xff]  }
 0x1ce   : > { %3446 = vmatpush1.bf16.msra.mxu0 %v5568_v7  ;;  %3592 = vmatpush1.bf16.msra.mxu1 %v5571_v8 }
 0x1cf   : > { %3447 = vmatprep.subr.bf16.mxu0 %v5576_v9  ;;  %3593 = vmatprep.subr.bf16.mxu1 %v5579_v35 }
 0x1d2   : > { %3448 = vmatpush1.bf16.msra.mxu0 %v5574_v51  ;;  %3594 = vmatpush1.bf16.msra.mxu1 %v5577_v10  ;;  %v5652_v51 = vld [vmem:[#allocation5 + $0x860] ss:$48 sps:$4 sm:$0xff]   ;;  %v5655_v10 = vld [vmem:[#allocation5 + $0x868] ss:$48 sps:$4 sm:$0xff]  }
 0x1d3   : > { %3449 = vmatprep.subr.bf16.mxu0 %v5582_v11  ;;  %3595 = vmatprep.subr.bf16.mxu1 %v5585_v12 }
 0x1d6   : > { %3450 = vmatpush1.bf16.msra.mxu0 %v5580_v16  ;;  %3596 = vmatpush1.bf16.msra.mxu1 %v5583_v40  ;;  %v5660_v16 = vld [vmem:[#allocation5 + $0x8c4] ss:$48 sps:$4 sm:$0xff]   ;;  %v5663_v40 = vld [vmem:[#allocation5 + $0x8cc] ss:$48 sps:$4 sm:$0xff]  }
 0x1d7   : > { %3451 = vmatprep.subr.bf16.mxu0 %v5588_v17  ;;  %3597 = vmatprep.subr.bf16.mxu1 %v5591_v18  ;;  %v5719_v17 = vld [vmem:[%s6288_s21 + $0x60] ss:$16 sps:$4 sm:$0xff]  }
 0x1d8   : > { %v5658_v18 = vld [vmem:[#allocation5 + $0x8c0] ss:$48 sps:$4 sm:$0xff]  }
 0x1da   : > { %3452 = vmatpush1.bf16.msra.mxu0 %v5586_v19  ;;  %3598 = vmatpush1.bf16.msra.mxu1 %v5589_v21  ;;  %v5661_v19 = vld [vmem:[#allocation5 + $0x8c8] ss:$48 sps:$4 sm:$0xff]   ;;  %v5666_v21 = vld [vmem:[#allocation5 + $0x924] ss:$48 sps:$4 sm:$0xff]  }
 0x1db   : > { %3453 = vmatprep.subr.bf16.mxu0 %v5594_v22  ;;  %3599 = vmatprep.subr.bf16.mxu1 %v5597_v24 }
 0x1de   : > { %3454 = vmatpush1.bf16.msra.mxu0 %v5592_v26  ;;  %3600 = vmatpush1.bf16.msra.mxu1 %v5595_v28  ;;  %v5669_v26 = vld [vmem:[#allocation5 + $0x92c] ss:$48 sps:$4 sm:$0xff]  }
 0x1df   : > { %3455 = vmatprep.subr.bf16.mxu0 %v5600_v29  ;;  %3601 = vmatprep.subr.bf16.mxu1 %v5603_v30  ;;  %v5720_v28 = vld [vmem:[%s6288_s21 + $0xc] ss:$16 sps:$4 sm:$0xff]  }
 0x1e2   : > { %3456 = vmatpush1.bf16.msra.mxu0 %v5598_v32  ;;  %3602 = vmatpush1.bf16.msra.mxu1 %v5601_v34 }
 0x1e3   : > { %3457 = vmatprep.subr.bf16.mxu0 %v5606_v36  ;;  %3603 = vmatprep.subr.bf16.mxu1 %v5609_v37  ;;  %v5664_v36 = vld [vmem:[#allocation5 + $0x920] ss:$48 sps:$4 sm:$0xff]   ;;  %v5667_v37 = vld [vmem:[#allocation5 + $0x928] ss:$48 sps:$4 sm:$0xff]  }
 0x1e6   : > { %3458 = vmatpush1.bf16.msra.mxu0 %v5604_v38  ;;  %3604 = vmatpush1.bf16.msra.mxu1 %v5607_v41 }
 0x1e7   : > { %3459 = vmatprep.subr.bf16.mxu0 %v5612_v42  ;;  %3605 = vmatprep.subr.bf16.mxu1 %v5615_v43  ;;  %v5672_v42 = vld [vmem:[#allocation5 + $0x984] ss:$48 sps:$4 sm:$0xff]   ;;  %v5675_v43 = vld [vmem:[#allocation5 + $0x98c] ss:$48 sps:$4 sm:$0xff]  }
 0x1ea   : > { %3460 = vmatpush1.bf16.msra.mxu0 %v5610_v44  ;;  %3606 = vmatpush1.bf16.msra.mxu1 %v5613_v46  ;;  %v5670_v44 = vld [vmem:[#allocation5 + $0x980] ss:$48 sps:$4 sm:$0xff]   ;;  %v5673_v46 = vld [vmem:[#allocation5 + $0x988] ss:$48 sps:$4 sm:$0xff]  }
 0x1eb   : > { %3502 = vmatprep.subr.bf16.mxu0 %v5618_v48  ;;  %3648 = vmatprep.subr.bf16.mxu1 %v5621_v49  ;;  %v5678_v48 = vld [vmem:[#allocation5 + $0x9e4] ss:$48 sps:$4 sm:$0xff]  }
 0x1ed   : > { %3462 = vmatmul.mubr.bf16.vlgmr.msra.gmra.mrb[32].mxu0 %v5713_v54  ;;  %3608 = vmatmul.mubr.bf16.vlgmr.msra.gmra.mrb[32].mxu1 %v5713_v54 }
 0x1ee   : > { %3503 = vmatpush1.bf16.msra.mxu0 %v5616_v50  ;;  %3649 = vmatpush1.bf16.msra.mxu1 %v5619_v52  ;;  %v5681_v52 = vld [vmem:[#allocation5 + $0x9ec] ss:$48 sps:$4 sm:$0xff]  }
 0x1ef   : > { %3504 = vmatprep.subr.bf16.mxu0 %v5624_v53  ;;  %3650 = vmatprep.subr.bf16.mxu1 %v5627_v5 }
 0x1f0   : > { %3471 = vmatprep.mubr.bf16.mxu0 %v5714_v58  ;;  %3617 = vmatprep.mubr.bf16.mxu1 %v5714_v58 }
 0x1f2   : > { %3505 = vmatpush1.bf16.msra.mxu0 %v5622_v55  ;;  %3651 = vmatpush1.bf16.msra.mxu1 %v5625_v56  ;;  %v5676_v56 = vld [vmem:[#allocation5 + $0x9e0] ss:$48 sps:$4 sm:$0xff]  }
 0x1f3   : > { %3506 = vmatprep.subr.bf16.mxu0 %v5630_v14  ;;  %3652 = vmatprep.subr.bf16.mxu1 %v5633_v57  ;;  %v5679_v14 = vld [vmem:[#allocation5 + $0x9e8] ss:$48 sps:$4 sm:$0xff]  }
 0x1f5   : > { %3472 = vmatmul.mubr.bf16.gmra.mrb[36].mxu0 %v5715_v20  ;;  %3618 = vmatmul.mubr.bf16.gmra.mrb[36].mxu1 %v5715_v20  ;;  %v5690_v20 = vld [vmem:[#allocation5 + $0xaa4] ss:$48 sps:$4 sm:$0xff]  }
 0x1f6   : > { %3507 = vmatpush1.bf16.msra.mxu0 %v5628_v13  ;;  %3653 = vmatpush1.bf16.msra.mxu1 %v5631_v59  ;;  %v5684_v13 = vld [vmem:[#allocation5 + $0xa44] ss:$48 sps:$4 sm:$0xff]   ;;  %v5687_v59 = vld [vmem:[#allocation5 + $0xa4c] ss:$48 sps:$4 sm:$0xff]  }
 0x1f7   : > { %3508 = vmatprep.subr.bf16.mxu0 %v5636_v60  ;;  %3654 = vmatprep.subr.bf16.mxu1 %v5639_v61  ;;  %v5682_v60 = vld [vmem:[#allocation5 + $0xa40] ss:$48 sps:$4 sm:$0xff]   ;;  %v5685_v61 = vld [vmem:[#allocation5 + $0xa48] ss:$48 sps:$4 sm:$0xff]  }
 0x1f8   : > { %3481 = vmatprep.mubr.bf16.mxu0 %v5716_v63  ;;  %3627 = vmatprep.mubr.bf16.mxu1 %v5716_v63 }
 0x1fa   : > { %3509 = vmatpush1.bf16.msra.mxu0 %v5634_v15  ;;  %3655 = vmatpush1.bf16.msra.mxu1 %v5637_v62 }
 0x1fb   : > { %3510 = vmatprep.subr.bf16.mxu0 %v5642_v23  ;;  %3656 = vmatprep.subr.bf16.mxu1 %v5645_v27  ;;  %v5693_v23 = vld [vmem:[#allocation5 + $0xaac] ss:$48 sps:$4 sm:$0xff]  }
 0x1fd   : > { %3482 = vmatmul.mubr.bf16.gmra.mrb[40].mxu0 %v5717_v3  ;;  %3628 = vmatmul.mubr.bf16.gmra.mrb[40].mxu1 %v5717_v3 }
 0x1fe   : > { %3511 = vmatpush1.bf16.msra.mxu0 %v5640_v0  ;;  %3657 = vmatpush1.bf16.msra.mxu1 %v5643_v1 }
 0x1ff   : > { %3512 = vmatprep.subr.bf16.mxu0 %v5648_v33  ;;  %3658 = vmatprep.subr.bf16.mxu1 %v5651_v2  ;;  %v5688_v33 = vld [vmem:[#allocation5 + $0xaa0] ss:$48 sps:$4 sm:$0xff]   ;;  %v5691_v2 = vld [vmem:[#allocation5 + $0xaa8] ss:$48 sps:$4 sm:$0xff]  }
 0x200   : > { %v6420_v31 = vpop.f32.mrb[0].mxu0  ;;  %v6422_v45 = vpop.f32.mrb[0].mxu1  ;;  %3491 = vmatprep.mubr.bf16.mxu0 %v5718_v47  ;;  %3637 = vmatprep.mubr.bf16.mxu1 %v5718_v47  ;;  %v5697_v47 = vld [vmem:[#allocation5 + $0xb08] ss:$48 sps:$4 sm:$0xff]  }
 0x201   : > { %v6425_v7 = vpop.f32.mrb[1].mxu0  ;;  %v6427_v8 = vpop.f32.mrb[1].mxu1 }
 0x202   : > { %v6429_v9 = vpop.f32.mrb[2].mxu0  ;;  %v6431_v35 = vpop.f32.mrb[2].mxu1  ;;  %3513 = vmatpush1.bf16.msra.mxu0 %v5646_v39  ;;  %3659 = vmatpush1.bf16.msra.mxu1 %v5649_v25  ;;  %v5696_v25 = vld [vmem:[#allocation5 + $0xb04] ss:$48 sps:$4 sm:$0xff]  }
 0x203   : > { %v6433_v11 = vpop.f32.mrb[3].mxu0  ;;  %v6435_v12 = vpop.f32.mrb[3].mxu1  ;;  %3514 = vmatprep.subr.bf16.mxu0 %v5654_v4  ;;  %3660 = vmatprep.subr.bf16.mxu1 %v5657_v6  ;;  %v5699_v4 = vld [vmem:[#allocation5 + $0xb0c] ss:$48 sps:$4 sm:$0xff]   ;;  %v5694_v6 = vld [vmem:[#allocation5 + $0xb00] ss:$48 sps:$4 sm:$0xff]  }
 0x205   : > { %3492 = vmatmul.mubr.bf16.gmra.mrb[44].mxu0 %v5719_v17  ;;  %3638 = vmatmul.mubr.bf16.gmra.mrb[44].mxu1 %v5719_v17  ;;  %v5708_v17 = vld [vmem:[#allocation5 + $0xbc4] ss:$48 sps:$4 sm:$0xff]  }
 0x206   : > { %3515 = vmatpush1.bf16.msra.mxu0 %v5652_v51  ;;  %3661 = vmatpush1.bf16.msra.mxu1 %v5655_v10  ;;  %v5702_v51 = vld [vmem:[#allocation5 + $0xb64] ss:$48 sps:$4 sm:$0xff]   ;;  %v5705_v10 = vld [vmem:[#allocation5 + $0xb6c] ss:$48 sps:$4 sm:$0xff]  }
 0x207   : > { %3516 = vmatprep.subr.bf16.mxu0 %v5660_v16  ;;  %3662 = vmatprep.subr.bf16.mxu1 %v5663_v40  ;;  %v5700_v16 = vld [vmem:[#allocation5 + $0xb60] ss:$48 sps:$4 sm:$0xff]   ;;  %v5703_v40 = vld [vmem:[#allocation5 + $0xb68] ss:$48 sps:$4 sm:$0xff]  }
 0x208   : > { %v6438_v22 = vpop.f32.mrb[4].mxu0  ;;  %v6440_v24 = vpop.f32.mrb[4].mxu1  ;;  %3534 = vmatprep.mubr.bf16.mxu0 %v5720_v28  ;;  %3680 = vmatprep.mubr.bf16.mxu1 %v5720_v28  ;;  %v5722_v28 = vld [vmem:[%s6288_s21 + $0x2c] ss:$16 sps:$4 sm:$0xff]  }
 0x209   : > { %v6443_v29 = vpop.f32.mrb[5].mxu0  ;;  %v6445_v30 = vpop.f32.mrb[5].mxu1 }
 0x20a   : > { %v6447_v32 = vpop.f32.mrb[6].mxu0  ;;  %v6449_v34 = vpop.f32.mrb[6].mxu1  ;;  %3517 = vmatpush1.bf16.msra.mxu0 %v5658_v18  ;;  %3663 = vmatpush1.bf16.msra.mxu1 %v5661_v19  ;;  %v5711_v18 = vld [vmem:[#allocation5 + $0xbcc] ss:$48 sps:$4 sm:$0xff]   ;;  %v5706_v19 = vld [vmem:[#allocation5 + $0xbc0] ss:$48 sps:$4 sm:$0xff]  }
 0x20b   : > { %v6451_v38 = vpop.f32.mrb[7].mxu0  ;;  %v6453_v41 = vpop.f32.mrb[7].mxu1  ;;  %3518 = vmatprep.subr.bf16.mxu0 %v5666_v21  ;;  %3664 = vmatprep.subr.bf16.mxu1 %v5669_v26  ;;  %v5709_v21 = vld [vmem:[#allocation5 + $0xbc8] ss:$48 sps:$4 sm:$0xff]  }
 0x20c   : > { %v5721_v26 = vld [vmem:[%s6288_s21 + $0x8] ss:$16 sps:$4 sm:$0xff]  }
 0x20e   : > { %3519 = vmatpush1.bf16.msra.mxu0 %v5664_v36  ;;  %3665 = vmatpush1.bf16.msra.mxu1 %v5667_v37  ;;  %v5723_v36 = vld [vmem:[%s6288_s21 + $0x28] ss:$16 sps:$4 sm:$0xff]   ;;  %v5724_v37 = vld [vmem:[%s6288_s21 + $0x4c] ss:$16 sps:$4 sm:$0xff]  }
 0x20f   : > { %3520 = vmatprep.subr.bf16.mxu0 %v5672_v42  ;;  %3666 = vmatprep.subr.bf16.mxu1 %v5675_v43  ;;  %v5725_v42 = vld [vmem:[%s6288_s21 + $0x48] ss:$16 sps:$4 sm:$0xff]   ;;  %v5726_v43 = vld [vmem:[%s6288_s21 + $0x6c] ss:$16 sps:$4 sm:$0xff]  }
 0x210   : > { %v6455_v49 = vpop.f32.mrb[8].mxu0  ;;  %v6457_v50 = vpop.f32.mrb[8].mxu1 }
 0x211   : > { %v6459_v53 = vpop.f32.mrb[9].mxu0  ;;  %v6461_v5 = vpop.f32.mrb[9].mxu1 }
 0x212   : > { %v6463_v54 = vpop.f32.mrb[10].mxu0  ;;  %v6465_v55 = vpop.f32.mrb[10].mxu1  ;;  %3521 = vmatpush1.bf16.msra.mxu0 %v5670_v44  ;;  %3667 = vmatpush1.bf16.msra.mxu1 %v5673_v46  ;;  %v5727_v44 = vld [vmem:[%s6288_s21 + $0x68] ss:$16 sps:$4 sm:$0xff]   ;;  %v785_v46 = vlaneseq }
 0x213   : > { %v6467_v57 = vpop.f32.mrb[11].mxu0  ;;  %v6469_v58 = vpop.f32.mrb[11].mxu1  ;;  %3522 = vmatprep.subr.bf16.mxu0 %v5678_v48  ;;  %3668 = vmatprep.subr.bf16.mxu1 %v5681_v52 }
 0x214   : > { %v6494_v48 = vshrl.u32 %v785_v46, 7 }
 0x216   : > { %3523 = vmatpush1.bf16.msra.mxu0 %v5676_v56  ;;  %3669 = vmatpush1.bf16.msra.mxu1 %v5679_v14  ;;  %6941 = vst [vmem:[#allocation22_spill] sm:$0xff] %v6494_v48  ;;  %v6920_v52 = vsub.s32 0, %v6494_v48  ;;  %v6919_v56 = vsub.s32 2, %v6494_v48  ;;  %v6918_v14 = vsub.s32 1, %v6494_v48 }
 0x217   : > { %3524 = vmatprep.subr.bf16.mxu0 %v5684_v13  ;;  %3670 = vmatprep.subr.bf16.mxu1 %v5687_v59  ;;  %v6917_v13 = vsub.s32 3, %v6494_v48  ;;  %v781_v59 = vld [vmem:[#allocation7] sm:$0xff] }
 0x218   : > { %v6471_v15 = vpop.f32.mrb[12].mxu0  ;;  %v6473_v62 = vpop.f32.mrb[12].mxu1 }
 0x219   : > { %v6475_v27 = vpop.f32.mrb[13].mxu0  ;;  %v6477_v63 = vpop.f32.mrb[13].mxu1 }
 0x21a   : > { %v6479_v0 = vpop.f32.mrb[14].mxu0  ;;  %v6481_v1 = vpop.f32.mrb[14].mxu1  ;;  %3525 = vmatpush1.bf16.msra.mxu0 %v5682_v60  ;;  %3671 = vmatpush1.bf16.msra.mxu1 %v5685_v61  ;;  %v6502_v60 = vrot.slane %v781_v59, %v6920_v52  ;;  %v6506_v61 = vrot.slane %v781_v59, %v6919_v56  ;;  %v3743_v56 = vld [vmem:[#allocation8 + $0xb0] sm:$0xff]  ;;  %v3744_v52 = vld [vmem:[#allocation8 + $0xb8] sm:$0xff] }
 0x21b   : > { %v6483_v3 = vpop.f32.mrb[15].mxu0  ;;  %v6485_v39 = vpop.f32.mrb[15].mxu1  ;;  %3526 = vmatprep.subr.bf16.mxu0 %v5690_v20  ;;  %3672 = vmatprep.subr.bf16.mxu1 %v5693_v23  ;;  %v6510_v20 = vrot.slane %v781_v59, %v6918_v14  ;;  %v6514_v23 = vrot.slane %v781_v59, %v6917_v13 }
 0x21c   : > { %6940 = vst [vmem:[#allocation21_spill] sm:$0xff] %v6485_v39 }
 0x21e   : > { %3527 = vmatpush1.bf16.msra.mxu0 %v5688_v33  ;;  %3673 = vmatpush1.bf16.msra.mxu1 %v5691_v2  ;;  %v803_v33 = vsub.s32 4, %v6494_v48  ;;  %v811_v2 = vsub.s32 6, %v6494_v48 }
 0x21f   : > { %3528 = vmatprep.subr.bf16.mxu0 %v5696_v25  ;;  %3674 = vmatprep.subr.bf16.mxu1 %v5699_v4  ;;  %v807_v25 = vsub.s32 5, %v6494_v48  ;;  %v815_v4 = vsub.s32 7, %v6494_v48 }
 0x222   : > { %3529 = vmatpush1.bf16.msra.mxu0 %v5694_v6  ;;  %3675 = vmatpush1.bf16.msra.mxu1 %v5697_v47  ;;  %v4804_v6 = vadd.f32 %v6420_v31, %v6502_v60  ;;  %v3721_v47 = vld [vmem:[#allocation8] sm:$0xff]  ;;  %v4822_v31 = vadd.f32 %v6431_v35, %v6506_v61 }
 0x223   : > { %3530 = vmatprep.subr.bf16.mxu0 %v5702_v51  ;;  %3676 = vmatprep.subr.bf16.mxu1 %v5705_v10  ;;  %v4820_v51 = vadd.f32 %v6422_v45, %v6506_v61  ;;  %v3723_v10 = vld [vmem:[#allocation8 + $0x10] sm:$0xff]  ;;  %v4823_v45 = vadd.f32 %v6435_v12, %v6514_v23 }
 0x225   : > { %v6546_v35 = vmul.f32 %v4820_v51, %v3723_v10  ;;  %v3730_v51 = vld [vmem:[#allocation8 + $0x48] sm:$0xff]  ;;  %v4825_v10 = vadd.f32 %v6445_v30, %v6514_v23  ;;  %v4812_v30 = vadd.f32 %v6455_v49, %v6502_v60  ;;  %v4830_v49 = vadd.f32 %v6465_v55, %v6506_v61 }
 0x226   : > { %3531 = vmatpush1.bf16.msra.mxu0 %v5700_v16  ;;  %3677 = vmatpush1.bf16.msra.mxu1 %v5703_v40  ;;  %v4805_v16 = vadd.f32 %v6425_v7, %v6510_v20  ;;  %v4821_v40 = vadd.f32 %v6427_v8, %v6514_v23  ;;  %v3726_v7 = vld [vmem:[#allocation8 + $0x28] sm:$0xff]  ;;  %v6538_v8 = vrot.slane %v781_v59, %v811_v2 }
 0x227   : > { %3532 = vmatprep.subr.bf16.mxu0 %v5708_v17  ;;  %3678 = vmatprep.subr.bf16.mxu1 %v5711_v18  ;;  %v3722_v17 = vld [vmem:[#allocation8 + $0x8] sm:$0xff]  ;;  %v3724_v18 = vld [vmem:[#allocation8 + $0x18] sm:$0xff] }
 0x22a   : > { %3533 = vmatpush1.bf16.msra.mxu0 %v5706_v19  ;;  %3679 = vmatpush1.bf16.msra.mxu1 %v5709_v21  ;;  %v4806_v19 = vadd.f32 %v6429_v9, %v6502_v60  ;;  %v3725_v21 = vld [vmem:[#allocation8 + $0x20] sm:$0xff]  ;;  %v6542_v9 = vrot.slane %v781_v59, %v815_v4  ;;  %v4824_v4 = vadd.f32 %v6440_v24, %v6506_v61 }
 0x22b   : > { %v4811_v24 = vadd.f32 %v6451_v38, %v6510_v20  ;;  %v3738_v38 = vld [vmem:[#allocation8 + $0x88] sm:$0xff] }
 0x22c   : > { %v6552_v12 = vmul.f32 %v4806_v19, %v3725_v21  ;;  %v3734_v19 = vld [vmem:[#allocation8 + $0x68] sm:$0xff]  ;;  %v3736_v21 = vld [vmem:[#allocation8 + $0x78] sm:$0xff] }
 0x22d   : > { %3535 = vmatmul.mubr.bf16.vlgmr.msra.gmra.mrb[32].mxu0 %v5721_v26  ;;  %3681 = vmatmul.mubr.bf16.vlgmr.msra.gmra.mrb[32].mxu1 %v5721_v26  ;;  %v4807_v26 = vadd.f32 %v6433_v11, %v6510_v20  ;;  %v6550_v11 = vmul.f32 %v4821_v40, %v3724_v18  ;;  %v4810_v40 = vadd.f32 %v6447_v32, %v6502_v60 }
 0x22e   : > { %3544 = vmatprep.mubr.bf16.mxu0 %v5722_v28  ;;  %3690 = vmatprep.mubr.bf16.mxu1 %v5722_v28  ;;  %v3727_v28 = vld [vmem:[#allocation8 + $0x30] sm:$0xff]  ;;  %v4826_v18 = vadd.f32 %v6449_v34, %v6506_v61  ;;  %v4828_v32 = vadd.f32 %v6457_v50, %v6506_v61  ;;  %v4813_v34 = vadd.f32 %v6459_v53, %v6510_v20 }
 0x22f   : > { %v6554_v46 = vmul.f32 %v4822_v31, %v3727_v28  ;;  %v3737_v31 = vld [vmem:[#allocation8 + $0x80] sm:$0xff]  ;;  %v3740_v28 = vld [vmem:[#allocation8 + $0x98] sm:$0xff]  ;;  %v4831_v50 = vadd.f32 %v6469_v58, %v6514_v23  ;;  %v6604_v39 = vmul.f32 %v4811_v24, %v3734_v19  ;;  %v4832_v24 = vadd.f32 %v6473_v62, %v6506_v61 }
 0x230   : > { %v6608_v58 = vmul.f32 %v4812_v30, %v3737_v31  ;;  %v3788_v31 = vld [vmem:[#allocation10 + $0x18] sm:$0xff] }
 0x235   : > { %3545 = vmatmul.mubr.bf16.gmra.mrb[36].mxu0 %v5723_v36  ;;  %3691 = vmatmul.mubr.bf16.gmra.mrb[36].mxu1 %v5723_v36  ;;  %v3728_v36 = vld [vmem:[#allocation8 + $0x38] sm:$0xff] }
 0x236   : > { %3554 = vmatprep.mubr.bf16.mxu0 %v5724_v37  ;;  %3700 = vmatprep.mubr.bf16.mxu1 %v5724_v37  ;;  %v6536_v37 = vrot.slane %v781_v59, %v803_v33  ;;  %v6556_v33 = vmul.f32 %v4807_v26, %v3726_v7  ;;  %v6558_v2 = vmul.f32 %v4823_v45, %v3728_v36  ;;  %v3739_v26 = vld [vmem:[#allocation8 + $0x90] sm:$0xff]  ;;  %v3741_v7 = vld [vmem:[#allocation8 + $0xa0] sm:$0xff] }
 0x237   : > { %v4829_v45 = vadd.f32 %v6461_v5, %v6514_v23  ;;  %v4815_v36 = vadd.f32 %v6467_v57, %v6510_v20 }
 0x23d   : > { %3555 = vmatmul.mubr.bf16.gmra.mrb[40].mxu0 %v5725_v42  ;;  %3701 = vmatmul.mubr.bf16.gmra.mrb[40].mxu1 %v5725_v42  ;;  %v6540_v42 = vrot.slane %v781_v59, %v807_v25  ;;  %v3729_v25 = vld [vmem:[#allocation8 + $0x40] sm:$0xff]  ;;  %v4808_v59 = vadd.f32 %v6438_v22, %v6502_v60  ;;  %v3735_v22 = vld [vmem:[#allocation8 + $0x70] sm:$0xff] }
 0x23e   : > { %3564 = vmatprep.mubr.bf16.mxu0 %v5726_v43  ;;  %3710 = vmatprep.mubr.bf16.mxu1 %v5726_v43  ;;  %v6544_v43 = vmul.f32 %v4804_v6, %v3721_v47  ;;  %v3731_v6 = vld [vmem:[#allocation8 + $0x50] sm:$0xff]  ;;  %v4809_v47 = vadd.f32 %v6443_v29, %v6510_v20  ;;  %v4827_v29 = vadd.f32 %v6453_v41, %v6514_v23 }
 0x23f   : > { %v4814_v41 = vadd.f32 %v6463_v54, %v6502_v60  ;;  %v6592_v13 = vmul.f32 %v4808_v59, %v3729_v25  ;;  %v6594_v53 = vmul.f32 %v4824_v4, %v3731_v6  ;;  %v3742_v54 = vld [vmem:[#allocation8 + $0xa8] sm:$0xff]  ;;  %v6602_v55 = vmul.f32 %v4826_v18, %v3735_v22  ;;  %v3787_v18 = vld [vmem:[#allocation10 + $0x10] sm:$0xff] }
 0x240   : > { %v6596_v5 = vmul.f32 %v4809_v47, %v3730_v51  ;;  %v6606_v57 = vmul.f32 %v4827_v29, %v3736_v21  ;;  %v6610_v25 = vmul.f32 %v4828_v32, %v3739_v26  ;;  %v6612_v59 = vmul.f32 %v4813_v34, %v3738_v38  ;;  %v3786_v21 = vld [vmem:[#allocation10 + $0x8] sm:$0xff]  ;;  %v3789_v34 = vld [vmem:[#allocation10 + $0x20] sm:$0xff]  ;;  %v3791_v38 = vld [vmem:[#allocation10 + $0x30] sm:$0xff] }
 0x241   : > { %v6614_v4 = vmul.f32 %v4829_v45, %v3740_v28  ;;  %v6616_v6 = vmul.f32 %v4814_v41, %v3741_v7  ;;  %v6618_v47 = vmul.f32 %v4830_v49, %v3743_v56  ;;  %v6620_v51 = vmul.f32 %v4815_v36, %v3742_v54  ;;  %v3790_v36 = vld [vmem:[#allocation10 + $0x28] sm:$0xff]  ;;  %v3792_v54 = vld [vmem:[#allocation10 + $0x38] sm:$0xff] }
 0x242   : > { %v4816_v22 = vadd.f32 %v6471_v15, %v6502_v60  ;;  %v6636_v32 = vadd.f32 %v6477_v63, %v6514_v23  ;;  %v3745_v63 = vld [vmem:[#allocation8 + $0xc0] sm:$0xff] }
 0x243   : > { %6942 = vst [vmem:[#allocation23_spill] sm:$0xff] %v6616_v6  ;;  %6943 = vst [vmem:[#allocation24_spill] sm:$0xff] %v6618_v47 }
 0x244   : > { %6944 = vst [vmem:[#allocation25_spill] sm:$0xff] %v6620_v51  ;;  %v6648_v6 = vmul.f32 %v4816_v22, %v3745_v63 }
 0x245   : > { %3565 = vmatmul.mubr.bf16.gmra.mrb[44].mxu0 %v5727_v44  ;;  %3711 = vmatmul.mubr.bf16.gmra.mrb[44].mxu1 %v5727_v44  ;;  %v6548_v44 = vmul.f32 %v4805_v16, %v3722_v17  ;;  %v3732_v16 = vld [vmem:[#allocation8 + $0x58] sm:$0xff]  ;;  %v3733_v17 = vld [vmem:[#allocation8 + $0x60] sm:$0xff] }
 0x246   : > { %v6598_v14 = vmul.f32 %v4825_v10, %v3732_v16  ;;  %v6600_v48 = vmul.f32 %v4810_v40, %v3733_v17  ;;  %v6622_v10 = vmul.f32 %v4831_v50, %v3744_v52  ;;  %v3785_v40 = vld [vmem:[#allocation10] sm:$0xff]  ;;  %v6632_v52 = vadd.f32 %v6475_v27, %v6510_v20 }
 0x248   : > { %6945 = vst [vmem:[#allocation26_spill] sm:$0xff] %v6622_v10 }
 0x280   : > { %v3244_v16 = vpop.f32.mrb[16].mxu0  ;;  %v3390_v17 = vpop.f32.mrb[16].mxu1 }
 0x281   : > { %v4836_v19 = vadd.f32 %v3244_v16, %v6536_v37  ;;  %v4852_v29 = vadd.f32 %v3390_v17, %v6538_v8  ;;  %v3246_v56 = vpop.f32.mrb[17].mxu0  ;;  %v3392_v30 = vpop.f32.mrb[17].mxu1  ;;  %v3747_v16 = vld [vmem:[#allocation8 + $0xd0] sm:$0xff] }
 0x282   : > { %v4837_v15 = vadd.f32 %v3246_v56, %v6540_v42  ;;  %v4853_v62 = vadd.f32 %v3392_v30, %v6542_v9  ;;  %v3248_v26 = vpop.f32.mrb[18].mxu0  ;;  %v3394_v45 = vpop.f32.mrb[18].mxu1 }
 0x283   : > { %v3817_v28 = vmul.f32 %v4836_v19, %v3785_v40  ;;  %v3819_v41 = vmul.f32 %v4852_v29, %v3787_v18  ;;  %v4838_v7 = vadd.f32 %v3248_v26, %v6536_v37  ;;  %v4854_v49 = vadd.f32 %v3394_v45, %v6538_v8  ;;  %v3250_v27 = vpop.f32.mrb[19].mxu0  ;;  %v3396_v50 = vpop.f32.mrb[19].mxu1 }
 0x284   : > { %v3818_v17 = vmul.f32 %v4837_v15, %v3786_v21  ;;  %v3820_v56 = vmul.f32 %v4853_v62, %v3788_v31  ;;  %v4839_v30 = vadd.f32 %v3250_v27, %v6540_v42  ;;  %v4855_v10 = vadd.f32 %v3396_v50, %v6542_v9 }
 0x285   : > { %v3849_v51 = vadd.f32 %v3817_v28, %v6544_v43  ;;  %v3851_v40 = vadd.f32 %v3819_v41, %v6546_v35  ;;  %v3821_v18 = vmul.f32 %v4838_v7, %v3789_v34  ;;  %v3823_v19 = vmul.f32 %v4854_v49, %v3791_v38  ;;  %v3793_v38 = vld [vmem:[#allocation10 + $0x40] sm:$0xff]  ;;  %v3795_v28 = vld [vmem:[#allocation10 + $0x50] sm:$0xff] }
 0x286   : > { %v3850_v29 = vadd.f32 %v3818_v17, %v6548_v44  ;;  %v3852_v26 = vadd.f32 %v3820_v56, %v6550_v11  ;;  %v3822_v45 = vmul.f32 %v4839_v30, %v3790_v36  ;;  %v3824_v47 = vmul.f32 %v4855_v10, %v3792_v54  ;;  %v3797_v41 = vld [vmem:[#allocation10 + $0x60] sm:$0xff]  ;;  %v3799_v49 = vld [vmem:[#allocation10 + $0x70] sm:$0xff]  ;;  %v3800_v56 = vld [vmem:[#allocation10 + $0x78] sm:$0xff] }
 0x287   : > { %v6650_v21 = vmul.f32 %v4832_v24, %v3747_v16  ;;  %v3853_v31 = vadd.f32 %v3821_v18, %v6552_v12  ;;  %v3855_v15 = vadd.f32 %v3823_v19, %v6554_v46  ;;  %v6658_v10 = vadd.f32 %v6479_v0, %v6502_v60  ;;  %v3798_v16 = vld [vmem:[#allocation10 + $0x68] sm:$0xff] }
 0x288   : > { %v4770_v62 = vpack.c.bf16 %v3850_v29, %v3849_v51  ;;  %v4771_v43 = vpack.c.bf16 %v3852_v26, %v3851_v40  ;;  %v3854_v35 = vadd.f32 %v3822_v45, %v6556_v33  ;;  %v3856_v34 = vadd.f32 %v3824_v47, %v6558_v2  ;;  %v3254_v44 = vpop.f32.mrb[20].mxu0  ;;  %v3400_v11 = vpop.f32.mrb[20].mxu1  ;;  %v3794_v33 = vld [vmem:[#allocation10 + $0x48] sm:$0xff]  ;;  %v3796_v2 = vld [vmem:[#allocation10 + $0x58] sm:$0xff] }
 0x289   : > { %v6662_v12 = vadd.f32 %v6481_v1, %v6506_v61  ;;  %v4840_v46 = vadd.f32 %v3254_v44, %v6536_v37  ;;  %v4856_v51 = vadd.f32 %v3400_v11, %v6538_v8  ;;  %v3256_v22 = vpop.f32.mrb[21].mxu0  ;;  %v3402_v24 = vpop.f32.mrb[21].mxu1  ;;  %v3746_v30 = vld [vmem:[#allocation8 + $0xc8] sm:$0xff]  ;;  %v3748_v40 = vld [vmem:[#allocation8 + $0xd8] sm:$0xff] }
 0x28a   : > { %3977 = vst [vmem:[%s6667_s29] sm:$0xff] %v4770_v62  ;;  %3978 = vst [vmem:[%s6667_s29 + $0x8] sm:$0xff] %v4771_v43  ;;  %v4772_v0 = vpack.c.bf16 %v3854_v35, %v3853_v31  ;;  %v4773_v60 = vpack.c.bf16 %v3856_v34, %v3855_v15  ;;  %v4841_v47 = vadd.f32 %v3256_v22, %v6540_v42  ;;  %v3258_v61 = vpop.f32.mrb[22].mxu0  ;;  %v3404_v7 = vpop.f32.mrb[22].mxu1  ;;  %v3801_v22 = vld [vmem:[#allocation10 + $0x80] sm:$0xff] }
 0x28b   : > { %v4857_v1 = vadd.f32 %v3402_v24, %v6542_v9  ;;  %v3825_v27 = vmul.f32 %v4840_v46, %v3793_v38  ;;  %v3827_v36 = vmul.f32 %v4856_v51, %v3795_v28  ;;  %v4842_v50 = vadd.f32 %v3258_v61, %v6536_v37  ;;  %v3260_v63 = vpop.f32.mrb[23].mxu0  ;;  %v3406_v17 = vpop.f32.mrb[23].mxu1  ;;  %v6946_v24 = vld [vmem:[#allocation21_spill] sm:$0xff] }
 0x28c   : > { %v4858_v54 = vadd.f32 %v3404_v7, %v6538_v8  ;;  %3979 = vst [vmem:[%s6667_s29 + $0x10] sm:$0xff] %v4772_v0  ;;  %3980 = vst [vmem:[%s6667_s29 + $0x18] sm:$0xff] %v4773_v60  ;;  %v3826_v18 = vmul.f32 %v4841_v47, %v3794_v33  ;;  %v4843_v29 = vadd.f32 %v3260_v63, %v6540_v42  ;;  %v3802_v60 = vld [vmem:[#allocation10 + $0x88] sm:$0xff]  ;;  %v3807_v7 = vld [vmem:[#allocation10 + $0xb0] sm:$0xff] }
 0x28d   : > { %v3828_v19 = vmul.f32 %v4857_v1, %v3796_v2  ;;  %v4859_v26 = vadd.f32 %v3406_v17, %v6542_v9  ;;  %v3857_v45 = vadd.f32 %v3825_v27, %v6592_v13  ;;  %v3859_v31 = vadd.f32 %v3827_v36, %v6594_v53  ;;  %v3806_v63 = vld [vmem:[#allocation10 + $0xa8] sm:$0xff]  ;;  %v3808_v17 = vld [vmem:[#allocation10 + $0xb8] sm:$0xff] }
 0x28e   : > { %v3829_v15 = vmul.f32 %v4842_v50, %v3797_v41  ;;  %v3831_v62 = vmul.f32 %v4858_v54, %v3799_v49  ;;  %v3858_v43 = vadd.f32 %v3826_v18, %v6596_v5  ;;  %v3830_v34 = vmul.f32 %v4843_v29, %v3798_v16 }
 0x28f   : > { %v3860_v35 = vadd.f32 %v3828_v19, %v6598_v14  ;;  %v3832_v44 = vmul.f32 %v4859_v26, %v3800_v56  ;;  %v6684_v38 = vmul.f32 %v6632_v52, %v3746_v30  ;;  %v6687_v11 = vmul.f32 %v6636_v32, %v3748_v40  ;;  %v3803_v52 = vld [vmem:[#allocation10 + $0x90] sm:$0xff]  ;;  %v3749_v56 = vld [vmem:[#allocation8 + $0xe0] sm:$0xff] }
 0x290   : > { %v3861_v28 = vadd.f32 %v3829_v15, %v6600_v48  ;;  %v3863_v13 = vadd.f32 %v3831_v62, %v6602_v55  ;;  %v4774_v46 = vpack.c.bf16 %v3858_v43, %v3857_v45  ;;  %v3862_v5 = vadd.f32 %v3830_v34, %v6604_v39  ;;  %v3264_v51 = vpop.f32.mrb[24].mxu0  ;;  %v3410_v33 = vpop.f32.mrb[24].mxu1  ;;  %v3804_v39 = vld [vmem:[#allocation10 + $0x98] sm:$0xff]  ;;  %v3751_v30 = vld [vmem:[#allocation8 + $0xf0] sm:$0xff]  ;;  %v3750_v62 = vld [vmem:[#allocation8 + $0xe8] sm:$0xff] }
 0x291   : > { %v4775_v53 = vpack.c.bf16 %v3860_v35, %v3859_v31  ;;  %v3864_v14 = vadd.f32 %v3832_v44, %v6606_v57  ;;  %v4819_v32 = vadd.f32 %v6483_v3, %v6510_v20  ;;  %v4835_v48 = vadd.f32 %v6946_v24, %v6514_v23  ;;  %v3266_v0 = vpop.f32.mrb[25].mxu0  ;;  %v3412_v47 = vpop.f32.mrb[25].mxu1  ;;  %v3805_v23 = vld [vmem:[#allocation10 + $0xa0] sm:$0xff]  ;;  %v3752_v43 = vld [vmem:[#allocation8 + $0xf8] sm:$0xff] }
 0x292   : > { %v4844_v55 = vadd.f32 %v3264_v51, %v6536_v37  ;;  %v4860_v2 = vadd.f32 %v3410_v33, %v6538_v8  ;;  %3981 = vst [vmem:[%s6667_s29 + $0x20] sm:$0xff] %v4774_v46  ;;  %v4776_v57 = vpack.c.bf16 %v3862_v5, %v3861_v28  ;;  %v4845_v61 = vadd.f32 %v3266_v0, %v6540_v42  ;;  %v3268_v20 = vpop.f32.mrb[26].mxu0  ;;  %v3414_v41 = vpop.f32.mrb[26].mxu1 }
 0x293   : > { %3982 = vst [vmem:[%s6667_s29 + $0x28] sm:$0xff] %v4775_v53  ;;  %v4777_v1 = vpack.c.bf16 %v3864_v14, %v3863_v13  ;;  %v4861_v3 = vadd.f32 %v3412_v47, %v6542_v9  ;;  %v4846_v36 = vadd.f32 %v3268_v20, %v6536_v37  ;;  %v4862_v50 = vadd.f32 %v3414_v41, %v6538_v8  ;;  %v3270_v54 = vpop.f32.mrb[27].mxu0  ;;  %v3416_v16 = vpop.f32.mrb[27].mxu1  ;;  %v6947_v53 = vld [vmem:[#allocation23_spill] sm:$0xff]  ;;  %v6948_v14 = vld [vmem:[#allocation24_spill] sm:$0xff] }
 0x294   : > { %v3833_v49 = vmul.f32 %v4844_v55, %v3801_v22  ;;  %v3835_v27 = vmul.f32 %v4860_v2, %v3803_v52  ;;  %3983 = vst [vmem:[%s6667_s29 + $0x30] sm:$0xff] %v4776_v57  ;;  %v3834_v40 = vmul.f32 %v4845_v61, %v3802_v60  ;;  %v4847_v19 = vadd.f32 %v3270_v54, %v6540_v42  ;;  %v6949_v22 = vld [vmem:[#allocation25_spill] sm:$0xff]  ;;  %v6950_v52 = vld [vmem:[#allocation26_spill] sm:$0xff]  ;;  %v3811_v2 = vld [vmem:[#allocation10 + $0xd0] sm:$0xff] }
 0x295   : > { %3984 = vst [vmem:[%s6667_s29 + $0x38] sm:$0xff] %v4777_v1  ;;  %v3836_v18 = vmul.f32 %v4861_v3, %v3804_v39  ;;  %v4863_v29 = vadd.f32 %v3416_v16, %v6542_v9  ;;  %v3837_v31 = vmul.f32 %v4846_v36, %v3805_v23  ;;  %v3839_v15 = vmul.f32 %v4862_v50, %v3807_v7  ;;  %v3810_v39 = vld [vmem:[#allocation10 + $0xc8] sm:$0xff]  ;;  %v3812_v1 = vld [vmem:[#allocation10 + $0xd8] sm:$0xff]  ;;  %v3815_v7 = vld [vmem:[#allocation10 + $0xf0] sm:$0xff] }
 0x296   : > { %v3865_v26 = vadd.f32 %v3833_v49, %v6608_v58  ;;  %v3867_v45 = vadd.f32 %v3835_v27, %v6610_v25  ;;  %v3866_v35 = vadd.f32 %v3834_v40, %v6612_v59  ;;  %v3838_v44 = vmul.f32 %v4847_v19, %v3806_v63  ;;  %v3814_v63 = vld [vmem:[#allocation10 + $0xe8] sm:$0xff] }
 0x297   : > { %v3868_v34 = vadd.f32 %v3836_v18, %v6614_v4  ;;  %v3840_v28 = vmul.f32 %v4863_v29, %v3808_v17  ;;  %v3781_v13 = vmul.f32 %v6658_v10, %v3749_v56  ;;  %v3783_v46 = vmul.f32 %v6662_v12, %v3751_v30  ;;  %v3809_v4 = vld [vmem:[#allocation10 + $0xc0] sm:$0xff]  ;;  %v3816_v17 = vld [vmem:[#allocation10 + $0xf8] sm:$0xff] }
 0x298   : > { %v3869_v5 = vadd.f32 %v3837_v31, %v6947_v53  ;;  %v3871_v58 = vadd.f32 %v3839_v15, %v6948_v14  ;;  %v4778_v51 = vpack.c.bf16 %v3866_v35, %v3865_v26  ;;  %v3870_v33 = vadd.f32 %v3838_v44, %v6949_v22  ;;  %v3274_v24 = vpop.f32.mrb[28].mxu0  ;;  %v3420_v55 = vpop.f32.mrb[28].mxu1 }
 0x299   : > { %v4779_v25 = vpack.c.bf16 %v3868_v34, %v3867_v45  ;;  %v3872_v59 = vadd.f32 %v3840_v28, %v6950_v52  ;;  %v3782_v0 = vmul.f32 %v4819_v32, %v3750_v62  ;;  %v3784_v10 = vmul.f32 %v4835_v48, %v3752_v43  ;;  %v3276_v47 = vpop.f32.mrb[29].mxu0  ;;  %v3422_v57 = vpop.f32.mrb[29].mxu1  ;;  %v3813_v48 = vld [vmem:[#allocation10 + $0xe0] sm:$0xff] }
 0x29a   : > { %v4848_v12 = vadd.f32 %v3274_v24, %v6536_v37  ;;  %v4864_v60 = vadd.f32 %v3420_v55, %v6538_v8  ;;  %3985 = vst [vmem:[%s6667_s29 + $0x40] sm:$0xff] %v4778_v51  ;;  %v4780_v61 = vpack.c.bf16 %v3870_v33, %v3869_v5  ;;  %v4849_v20 = vadd.f32 %v3276_v47, %v6540_v42  ;;  %v3278_v32 = vpop.f32.mrb[30].mxu0  ;;  %v3424_v41 = vpop.f32.mrb[30].mxu1 }
 0x29b   : > { %3986 = vst [vmem:[%s6667_s29 + $0x48] sm:$0xff] %v4779_v25  ;;  %v4781_v3 = vpack.c.bf16 %v3872_v59, %v3871_v58  ;;  %v4865_v23 = vadd.f32 %v3422_v57, %v6542_v9  ;;  %v4850_v36 = vadd.f32 %v3278_v32, %v6536_v37  ;;  %v4866_v50 = vadd.f32 %v3424_v41, %v6538_v8  ;;  %v3280_v54 = vpop.f32.mrb[31].mxu0  ;;  %v3426_v16 = vpop.f32.mrb[31].mxu1 }
 0x29c   : > { %v3841_v49 = vmul.f32 %v4848_v12, %v3809_v4  ;;  %v3843_v27 = vmul.f32 %v4864_v60, %v3811_v2  ;;  %3987 = vst [vmem:[%s6667_s29 + $0x50] sm:$0xff] %v4780_v61  ;;  %v3842_v56 = vmul.f32 %v4849_v20, %v3810_v39  ;;  %v4851_v40 = vadd.f32 %v3280_v54, %v6540_v42 }
 0x29d   : > { %3988 = vst [vmem:[%s6667_s29 + $0x58] sm:$0xff] %v4781_v3  ;;  %v3844_v30 = vmul.f32 %v4865_v23, %v3812_v1  ;;  %v4867_v18 = vadd.f32 %v3426_v16, %v6542_v9  ;;  %v3845_v8 = vmul.f32 %v4850_v36, %v3813_v48  ;;  %v3847_v29 = vmul.f32 %v4866_v50, %v3815_v7 }
 0x29e   : > { %v3873_v19 = vadd.f32 %v3841_v49, %v6648_v6  ;;  %v3875_v37 = vadd.f32 %v3843_v27, %v6650_v21  ;;  %v3874_v26 = vadd.f32 %v3842_v56, %v6684_v38  ;;  %v3846_v31 = vmul.f32 %v4851_v40, %v3814_v63 }
 0x29f   : > { %v3876_v45 = vadd.f32 %v3844_v30, %v6687_v11  ;;  %v3848_v15 = vmul.f32 %v4867_v18, %v3816_v17  ;;  %v3877_v42 = vadd.f32 %v3845_v8, %v3781_v13  ;;  %v3879_v9 = vadd.f32 %v3847_v29, %v3783_v46 }
 0x2a0   : > { %v4782_v6 = vpack.c.bf16 %v3874_v26, %v3873_v19  ;;  %v3878_v62 = vadd.f32 %v3846_v31, %v3782_v0 }
 0x2a1   : > { %v4783_v21 = vpack.c.bf16 %v3876_v45, %v3875_v37  ;;  %v3880_v43 = vadd.f32 %v3848_v15, %v3784_v10 }
 0x2a2   : > { %3989 = vst [vmem:[%s6667_s29 + $0x60] sm:$0xff] %v4782_v6  ;;  %v4784_v38 = vpack.c.bf16 %v3878_v62, %v3877_v42 }
 0x2a3   : > { %3990 = vst [vmem:[%s6667_s29 + $0x68] sm:$0xff] %v4783_v21  ;;  %v4785_v11 = vpack.c.bf16 %v3880_v43, %v3879_v9 }
 0x2a4   : > { %3991 = vst [vmem:[%s6667_s29 + $0x70] sm:$0xff] %v4784_v38 }
 0x2a5   : > { %3992 = vst [vmem:[%s6667_s29 + $0x78] sm:$0xff] %v4785_v11 }
 0x2a6   : > { %5883 = shalt.err (!%p5880_p0)
}
 0x2a7   : > { %s5884_s15 = scalar_lea.hbm %s6742_s14, 2048  ;;  %s5888_s21 = scalar_lea.hbm %s6909_s5, 4096 }
 0x2a8   : > { %p5885_p4 = scmp.ne.s32.totalorder %s6742_s14, %s5884_s15  ;;  %p5889_p12 = scmp.lt.u32.totalorder %s6742_s14, %s6909_s5 }
 0x2a9   : > { %p5890_p1 = scmp.lt.u32.totalorder %s5888_s21, %s5884_s15  ;;  %p5892_p10 = scmp.lt.u32.totalorder %s5884_s15, %s6742_s14 }
 0x2aa   : > { %p5886_p13 = pnand %p5885_p4, %p6226_p5 }
 0x2ab   : > { %p5891_p11 = por %p5890_p1, %p5889_p12 }
 0x2ac   : > { %p5887_p6 = pneg %p5886_p13 }
 0x2ad   : > { %p5893_p3 = por %p5892_p10, %p5891_p11 }
 0x2af   : > { %p5894_p2 = pnand %p5893_p3, %p5887_p6 }
 0x2b1   : > { %5897 = shalt.err (!%p5894_p2)
}
 0x2b2   : > { %s6006_s13 = smov 256   ;;  %s6007_s27 = smov 16   ;;  %v782_v35 = vld [vmem:[#allocation7 + $0x8] sm:$0xf]  ;;  %v6951_v34 = vld [vmem:[#allocation22_spill] sm:$0xff] }
 0x2b3   : > { %5014 = dma.vmem_to_hbm [thread:$0]  (%p6226_p5), %s6744_s9, 2048, %s6742_s14, %s4106_s17, %s6006_s13, %s6006_s13, %s6007_s27   ;;  %v6952_v44 = vsub.s32 0, %v6951_v34  ;;  %v6953_v13 = vsub.s32 2, %v6951_v34  ;;  %v6954_v53 = vsub.s32 1, %v6951_v34  ;;  %v6955_v14 = vsub.s32 3, %v6951_v34 }
 0x2b4   : > { %s6802_s9 = scalar_lea.vmem [#allocation12], %s6284_s18  ;;  %s6848_s28 = scalar_lea.hbm %s6910_s6, %s4802_s7 }
 0x2b5   : > { %v6779_v28 = vrot.slane %v782_v35, %v6952_v44  ;;  %v6783_v46 = vrot.slane %v782_v35, %v6953_v13  ;;  %v6787_v5 = vrot.slane %v782_v35, %v6954_v53  ;;  %v6791_v58 = vrot.slane %v782_v35, %v6955_v14  ;;  %s4146_s18 = sshll.u32 %s6802_s9, 4  ;;  %s4111_s10 = scalar_lea.sflag [#allocation13], %s6281_s20  ;;  %s6850_s18 = int_to_ptr.vmem [resolvable:$true] %s4146_s18 }
 0x2b6   : > { %s5898_s30 = scalar_lea.vmem %s6850_s18, 2048  ;;  %s6008_s15 = smov [#allocation12]  }
 0x2b7   : > { %p5899_p8 = scmp.ne.s32.totalorder %s6850_s18, %s5898_s30  ;;  %s5902_s24 = sshll.u32 %s6008_s15, 4  ;;  %s5903_s24 = int_to_ptr.vmem [resolvable:$false] %s5902_s24 }
 0x2b8   : > { %s5904_s1 = scalar_lea.vmem %s5903_s24, 4096  ;;  %p5905_p0 = scmp.lt.s32.totalorder %s6850_s18, %s5903_s24 }
 0x2b9   : > { %p5900_p7 = pnand %p5899_p8, %p6226_p5  ;;  %p5906_p4 = scmp.lt.s32.totalorder %s5904_s1, %s5898_s30 }
 0x2bb   : > { %p5901_p9 = pneg %p5900_p7  ;;  %p5907_p13 = por %p5906_p4, %p5905_p0 }
 0x2bd   : > { %p5908_p6 = pnand %p5907_p13, %p5901_p9 }
 0x300   : > { %v3536_v51 = vpop.f32.mrb[32].mxu0  ;;  %v3682_v25 = vpop.f32.mrb[32].mxu1 }
 0x301   : > { %v4868_v22 = vadd.f32 %v3536_v51, %v6779_v28  ;;  %v4884_v33 = vadd.f32 %v3682_v25, %v6783_v46  ;;  %v3538_v52 = vpop.f32.mrb[33].mxu0  ;;  %v3684_v59 = vpop.f32.mrb[33].mxu1 }
 0x302   : > { %v4869_v24 = vadd.f32 %v3538_v52, %v6787_v5  ;;  %v4885_v4 = vadd.f32 %v3684_v59, %v6791_v58  ;;  %v3540_v55 = vpop.f32.mrb[34].mxu0  ;;  %v3686_v2 = vpop.f32.mrb[34].mxu1 }
 0x303   : > { %v4870_v0 = vadd.f32 %v3540_v55, %v6779_v28  ;;  %v4886_v10 = vadd.f32 %v3686_v2, %v6783_v46  ;;  %v3542_v12 = vpop.f32.mrb[35].mxu0  ;;  %v3688_v60 = vpop.f32.mrb[35].mxu1 }
 0x304   : > { %v4786_v47 = vpack.c.bf16 %v4869_v24, %v4868_v22  ;;  %v4787_v39 = vpack.c.bf16 %v4885_v4, %v4884_v33  ;;  %v4871_v57 = vadd.f32 %v3542_v12, %v6787_v5  ;;  %v4887_v1 = vadd.f32 %v3688_v60, %v6791_v58 }
 0x306   : > { %4089 = vst [vmem:[%s6802_s9] sm:$0xff] %v4786_v47  ;;  %4090 = vst [vmem:[%s6802_s9 + $0x8] sm:$0xff] %v4787_v39  ;;  %v4788_v61 = vpack.c.bf16 %v4871_v57, %v4870_v0  ;;  %v4789_v3 = vpack.c.bf16 %v4887_v1, %v4886_v10 }
 0x308   : > { %4091 = vst [vmem:[%s6802_s9 + $0x10] sm:$0xff] %v4788_v61  ;;  %4092 = vst [vmem:[%s6802_s9 + $0x18] sm:$0xff] %v4789_v3  ;;  %v3546_v20 = vpop.f32.mrb[36].mxu0  ;;  %v3692_v23 = vpop.f32.mrb[36].mxu1 }
 0x309   : > { %v4872_v32 = vadd.f32 %v3546_v20, %v6779_v28  ;;  %v4888_v48 = vadd.f32 %v3692_v23, %v6783_v46  ;;  %v3548_v41 = vpop.f32.mrb[37].mxu0  ;;  %v3694_v7 = vpop.f32.mrb[37].mxu1 }
 0x30a   : > { %v4873_v49 = vadd.f32 %v3548_v41, %v6787_v5  ;;  %v4889_v27 = vadd.f32 %v3694_v7, %v6791_v58  ;;  %v3550_v36 = vpop.f32.mrb[38].mxu0  ;;  %v3696_v50 = vpop.f32.mrb[38].mxu1 }
 0x30b   : > { %v4874_v54 = vadd.f32 %v3550_v36, %v6779_v28  ;;  %v4890_v63 = vadd.f32 %v3696_v50, %v6783_v46  ;;  %v3552_v16 = vpop.f32.mrb[39].mxu0  ;;  %v3698_v17 = vpop.f32.mrb[39].mxu1 }
 0x30c   : > { %v4790_v56 = vpack.c.bf16 %v4873_v49, %v4872_v32  ;;  %v4791_v30 = vpack.c.bf16 %v4889_v27, %v4888_v48  ;;  %v4875_v40 = vadd.f32 %v3552_v16, %v6787_v5  ;;  %v4891_v18 = vadd.f32 %v3698_v17, %v6791_v58 }
 0x30e   : > { %4093 = vst [vmem:[%s6802_s9 + $0x20] sm:$0xff] %v4790_v56  ;;  %4094 = vst [vmem:[%s6802_s9 + $0x28] sm:$0xff] %v4791_v30  ;;  %v4792_v19 = vpack.c.bf16 %v4875_v40, %v4874_v54  ;;  %v4793_v37 = vpack.c.bf16 %v4891_v18, %v4890_v63 }
 0x310   : > { %4095 = vst [vmem:[%s6802_s9 + $0x30] sm:$0xff] %v4792_v19  ;;  %4096 = vst [vmem:[%s6802_s9 + $0x38] sm:$0xff] %v4793_v37  ;;  %v3556_v8 = vpop.f32.mrb[40].mxu0  ;;  %v3702_v29 = vpop.f32.mrb[40].mxu1 }
 0x311   : > { %v4876_v26 = vadd.f32 %v3556_v8, %v6779_v28  ;;  %v4892_v45 = vadd.f32 %v3702_v29, %v6783_v46  ;;  %v3558_v31 = vpop.f32.mrb[41].mxu0  ;;  %v3704_v15 = vpop.f32.mrb[41].mxu1 }
 0x312   : > { %v4877_v42 = vadd.f32 %v3558_v31, %v6787_v5  ;;  %v4893_v9 = vadd.f32 %v3704_v15, %v6791_v58  ;;  %v3560_v6 = vpop.f32.mrb[42].mxu0  ;;  %v3706_v21 = vpop.f32.mrb[42].mxu1 }
 0x313   : > { %v4878_v62 = vadd.f32 %v3560_v6, %v6779_v28  ;;  %v4894_v43 = vadd.f32 %v3706_v21, %v6783_v46  ;;  %v3562_v38 = vpop.f32.mrb[43].mxu0  ;;  %v3708_v11 = vpop.f32.mrb[43].mxu1 }
 0x314   : > { %v4794_v35 = vpack.c.bf16 %v4877_v42, %v4876_v26  ;;  %v4795_v34 = vpack.c.bf16 %v4893_v9, %v4892_v45  ;;  %v4879_v44 = vadd.f32 %v3562_v38, %v6787_v5  ;;  %v4895_v13 = vadd.f32 %v3708_v11, %v6791_v58 }
 0x316   : > { %4097 = vst [vmem:[%s6802_s9 + $0x40] sm:$0xff] %v4794_v35  ;;  %4098 = vst [vmem:[%s6802_s9 + $0x48] sm:$0xff] %v4795_v34  ;;  %v4796_v53 = vpack.c.bf16 %v4879_v44, %v4878_v62  ;;  %v4797_v14 = vpack.c.bf16 %v4895_v13, %v4894_v43 }
 0x318   : > { %4099 = vst [vmem:[%s6802_s9 + $0x50] sm:$0xff] %v4796_v53  ;;  %4100 = vst [vmem:[%s6802_s9 + $0x58] sm:$0xff] %v4797_v14  ;;  %v3566_v51 = vpop.f32.mrb[44].mxu0  ;;  %v3712_v25 = vpop.f32.mrb[44].mxu1 }
 0x319   : > { %v4880_v22 = vadd.f32 %v3566_v51, %v6779_v28  ;;  %v4896_v33 = vadd.f32 %v3712_v25, %v6783_v46  ;;  %v3568_v52 = vpop.f32.mrb[45].mxu0  ;;  %v3714_v59 = vpop.f32.mrb[45].mxu1 }
 0x31a   : > { %v4881_v24 = vadd.f32 %v3568_v52, %v6787_v5  ;;  %v4897_v4 = vadd.f32 %v3714_v59, %v6791_v58  ;;  %v3570_v55 = vpop.f32.mrb[46].mxu0  ;;  %v3716_v2 = vpop.f32.mrb[46].mxu1 }
 0x31b   : > { %v4882_v0 = vadd.f32 %v3570_v55, %v6779_v28  ;;  %v4898_v10 = vadd.f32 %v3716_v2, %v6783_v46  ;;  %v3572_v12 = vpop.f32.mrb[47].mxu0  ;;  %v3718_v60 = vpop.f32.mrb[47].mxu1 }
 0x31c   : > { %v4798_v47 = vpack.c.bf16 %v4881_v24, %v4880_v22  ;;  %v4799_v39 = vpack.c.bf16 %v4897_v4, %v4896_v33  ;;  %v4883_v57 = vadd.f32 %v3572_v12, %v6787_v5  ;;  %v4899_v1 = vadd.f32 %v3718_v60, %v6791_v58 }
 0x31e   : > { %4101 = vst [vmem:[%s6802_s9 + $0x60] sm:$0xff] %v4798_v47  ;;  %4102 = vst [vmem:[%s6802_s9 + $0x68] sm:$0xff] %v4799_v39  ;;  %v4800_v61 = vpack.c.bf16 %v4883_v57, %v4882_v0  ;;  %v4801_v3 = vpack.c.bf16 %v4899_v1, %v4898_v10 }
 0x320   : > { %4103 = vst [vmem:[%s6802_s9 + $0x70] sm:$0xff] %v4800_v61  ;;  %4104 = vst [vmem:[%s6802_s9 + $0x78] sm:$0xff] %v4801_v3 }
 0x321   : > { %5911 = shalt.err (!%p5908_p6)
}
 0x322   : > { %s5912_s7 = scalar_lea.hbm %s6848_s28, 2048  ;;  %s5916_s29 = scalar_lea.hbm %s6910_s6, 4096 }
 0x323   : > { %p5913_p12 = scmp.ne.s32.totalorder %s6848_s28, %s5912_s7  ;;  %p5917_p10 = scmp.lt.u32.totalorder %s6848_s28, %s6910_s6 }
 0x324   : > { %p5918_p3 = scmp.lt.u32.totalorder %s5916_s29, %s5912_s7  ;;  %p5920_p8 = scmp.lt.u32.totalorder %s5912_s7, %s6848_s28 }
 0x325   : > { %p5914_p1 = pnand %p5913_p12, %p6226_p5 }
 0x326   : > { %p5919_p2 = por %p5918_p3, %p5917_p10 }
 0x327   : > { %p5915_p11 = pneg %p5914_p1 }
 0x328   : > { %p5921_p7 = por %p5920_p8, %p5919_p2 }
 0x32a   : > { %p5922_p9 = pnand %p5921_p7, %p5915_p11 }
 0x32c   : > { %5925 = shalt.err (!%p5922_p9)
}
 0x32d   : > { %5015 = dma.vmem_to_hbm [thread:$0]  (%p6226_p5), %s6850_s18, 2048, %s6848_s28, %s4111_s10, %s6006_s13, %s6006_s13, %s6007_s27  }
 0x32e PF: > { %s6956_s14 = sld [smem:[#allocation19_spill]]  ;;  %s6957_s17 = sld [smem:[#allocation20_spill]] }
 0x32f   : > { %p6959_p4 = scmp.ge.s32.totalorder %s5992_s26, 2 }
 0x334   : > { %s4161_s30 = sand.u32 1, %s6956_s14   ;;  %p6958_p0 = scmp.ne.s32.totalorder %s6957_s17, 0 }
 0x335   : > { %s4162_s15 = scalar_lea.sflag [#allocation4], %s4161_s30 }
 0x336   : > { %p5036_p13 = pnand %p6959_p4, %p6958_p0 }
 0x338   : > { %5963 = dma.done.wait (!%p5036_p13), %s4162_s15, 2048  }
 0x339   : > { %5965 = vsyncadd (!%p5036_p13), %s4162_s15, 4294965248  ;;  %s4171_s16 = scalar_lea.sflag [#allocation13], %s4161_s30 }
 0x33a   : > { %5967 = dma.done.wait (!%p5036_p13), %s4171_s16, 2048  }
 0x33b   : > { %5969 = vsyncadd (!%p5036_p13), %s4171_s16, 4294965248  ;;  %s28_s26 = sadd.s32 1, %s5992_s26   ;;  %s6960_s21 = smov %s5976_s22 }
 0x33c   : > { %p25_p6 = scmp.ge.s32.totalorder %s28_s26, 4   ;;  %s6961_s22 = smov %s5980_s23 }
 0x33d   : > { %s6962_s23 = smov %s6235_s19  ;;  %s6963_s24 = smov %s5988_s25 }
 0x33e   : > { %s6964_s25 = smov %s6966_s12  ;;  %27 = sbr.rel (!%p25_p6) target bundleno = 12 (0xc), region = 120 }
 0x345   :  { %4176 = vsyncpa [#allocation3], 1 }
 0x346   :  { %4178 = vsyncpa [#allocation3 + $0x1], 1 }
 0x347   :  { %4179 = vsyncpa [#allocation6], 1 }
 0x348   :  { %4180 = vsyncpa [#allocation9], 1 }
 0x349   :  { %4181 = vsyncpa [#allocation4], 1 }
 0x34a   :  { %4183 = vsyncpa [#allocation4 + $0x1], 1 }
 0x34b   :  { %4184 = vsyncpa [#allocation13], 1 }
 0x34c   :  { %4186 = vsyncpa [#allocation13 + $0x1], 1 }

</bundles_post_ra>
